<compile_context>
chip_gen: v6e
topology: v6e:2x2x1
jax: 0.10.0
libtpu: 0.0.40
codegen_flags: <defaults>
</compile_context>

<pallas_src>
import functools

import jax
import jax.numpy as jnp
from jax.experimental import pallas as pl
from jax.experimental.pallas import tpu as pltpu

KSIZE = 7                      # Conv1d kernel_size=7 in the module
_VMEM_LIMIT_BYTES = 32 * 1024 * 1024


def _round_up(x, m):
    return ((x + m - 1) // m) * m


def _choose_batch_tile(batch, lp, cin, cout, cpad, max_pad, *,
                       vmem_budget=18 << 20, target_lanes=512, max_lanes=4096):
    """Largest batch tile that fits the VMEM budget; prefers >=2 grid steps."""
    def vmem_bytes(bt):
        wa = bt * lp
        return (2 * cin * wa * 2                 # input blocks  (bf16, 2x buffered)
                + 2 * cout * wa * 4              # output blocks (f32,  2x buffered)
                + cpad * (wa + 2 * max_pad) * 2  # resident act slab (bf16)
                + KSIZE * cpad * wa * 2)         # im2col slab (bf16)

    candidates = [bt for bt in range(1, batch + 1)
                  if batch % bt == 0 and bt * lp <= max_lanes
                  and vmem_bytes(bt) <= vmem_budget]
    if not candidates:
        return 1
    multi_step = [bt for bt in candidates if batch // bt >= 2]
    # Keep >=2 grid steps (v7x has 2 TensorCores) once the tile is lane-dense.
    if multi_step and max(multi_step) * lp >= target_lanes:
        return max(multi_step)
    return max(candidates)


def _fused_block_kernel(x_ref, w_ref, b_ref, o_ref, act_buf, col_buf, *,
                        num_layer, dilations, length, lp, cin, cout, cpad,
                        max_pad, wa):
    """Fused num_layer x (dilated Conv1d + bias + ReLU) on one lane-dense slab.

    x_ref   (cin,  wa)              bf16, wa = bt*lp, per-element halos pre-zeroed
    w_ref   (num_layer, cout, 7*cpad) bf16, tap-major flattened, zero-padded chans
    b_ref   (num_layer, cout, 1)    f32
    o_ref   (cout, wa)              output slab (f32), halos masked to zero
    act_buf (cpad, wa + 2*max_pad)  bf16 VMEM: resident activations
    col_buf (7*cpad, wa)            bf16 VMEM: im2col slab
    """
    wa_ext = wa + 2 * max_pad
    minc = min(cin, cout)

    # Zero only what no layer rewrites: unused channel rows (they feed the
    # zero-weight part of the contraction and must be finite) and the outer
    # halo columns.  Cheap, and megacore-safe because it runs every step.
    if minc < cpad:
        act_buf[minc:cpad, :] = jnp.zeros((cpad - minc, wa_ext), jnp.bfloat16)
    act_buf[0:minc, 0:max_pad] = jnp.zeros((minc, max_pad), jnp.bfloat16)
    act_buf[0:minc, max_pad + wa:wa_ext] = jnp.zeros((minc, max_pad),
                                                     jnp.bfloat16)

    # Input load: one lane-dense store (halos inside the slab come in as zeros).
    act_buf[0:cin, max_pad:max_pad + wa] = x_ref[...]

    # Valid-column mask: in-slab halo columns must be re-zeroed before each
    # writeback so the next layer sees "same" zero padding.
    cols = jax.lax.broadcasted_iota(jnp.int32, (1, wa), 1)
    pos = cols % lp
    valid = (pos >= max_pad) & (pos < max_pad + length)

    for i in range(num_layer):
        d = dilations[i]
        # im2col: 7 dilated taps, each one full-width shifted copy; destination
        # row blocks start at k*cpad (sublane-tile aligned, cpad % 16 == 0).
        for k in range(KSIZE):
            start = max_pad + (k - KSIZE // 2) * d
            col_buf[k * cpad:(k + 1) * cpad, :] = act_buf[:, start:start + wa]

        # One MXU matmul per layer: bf16 inputs, f32 accumulation.
        y = jnp.dot(w_ref[i], col_buf[...],
                    preferred_element_type=jnp.float32)          # (cout, wa)
        y = jnp.maximum(y + b_ref[i], 0.0)                       # bias + ReLU
        y = jnp.where(valid, y, 0.0)                             # re-zero halos
        # Dropout == identity in eval mode.

        if i + 1 < num_layer:
            act_buf[0:cout, max_pad:max_pad + wa] = y.astype(jnp.bfloat16)
        else:
            o_ref[...] = y.astype(o_ref.dtype)


def fused_dilated_conv_block(x_ncl, w_stack, b_stack, dilations, *, cin, cout,
                             cpad, batch_tile=None):
    """x_ncl: (B, Cin, L) f32. Returns (B, Cout, L). All layers in one call."""
    n, cin_x, length = x_ncl.shape
    assert cin_x == cin
    num_layer = int(w_stack.shape[0])
    max_pad = max(dilations) * (KSIZE // 2)
    lp = length + 2 * max_pad

    if batch_tile is None:
        batch_tile = _choose_batch_tile(n, lp, cin, cout, cpad, max_pad)
    bt = batch_tile
    assert n % bt == 0, "batch must be divisible by the batch tile"
    nt = n // bt
    wa = bt * lp

    # One wrapper pad + layout shuffle so the kernel sees lane-dense (C, bt*lp)
    # slabs with per-element zero halos already in place (bf16 halves the DMA).
    x_pad = jnp.pad(x_ncl, ((0, 0), (0, 0), (max_pad, max_pad)))
    x_slab = (x_pad.reshape(nt, bt, cin, lp)
              .transpose(0, 2, 1, 3)
              .reshape(nt, cin, wa)
              .astype(jnp.bfloat16))

    kernel = functools.partial(
        _fused_block_kernel, num_layer=num_layer, dilations=tuple(dilations),
        length=length, lp=lp, cin=cin, cout=cout, cpad=cpad, max_pad=max_pad,
        wa=wa)

    flops = int(num_layer * 2 * cout * KSIZE * cpad * wa * nt)
    bytes_accessed = int(x_slab.size * 2 + nt * cout * wa * 4
                         + w_stack.size * 2 + b_stack.size * 4)

    out_slab = pl.pallas_call(
        kernel,
        out_shape=jax.ShapeDtypeStruct((nt, cout, wa), x_ncl.dtype),
        grid=(nt,),
        in_specs=[
            pl.BlockSpec((None, cin, wa), lambda i: (i, 0, 0)),
            pl.BlockSpec((num_layer, cout, KSIZE * cpad), lambda i: (0, 0, 0)),
            pl.BlockSpec((num_layer, cout, 1), lambda i: (0, 0, 0)),
        ],
        out_specs=pl.BlockSpec((None, cout, wa), lambda i: (i, 0, 0)),
        scratch_shapes=[
            pltpu.VMEM((cpad, wa + 2 * max_pad), jnp.bfloat16),   # resident acts
            pltpu.VMEM((KSIZE * cpad, wa), jnp.bfloat16),         # im2col slab
        ],
        compiler_params=pltpu.CompilerParams(
            dimension_semantics=("parallel",),
            vmem_limit_bytes=_VMEM_LIMIT_BYTES),
        cost_estimate=pl.CostEstimate(flops=flops, transcendentals=0,
                                      bytes_accessed=bytes_accessed),
    )(x_slab, w_stack, b_stack)

    out = (out_slab.reshape(nt, cout, bt, lp)
           .transpose(0, 2, 1, 3)
           .reshape(n, cout, lp)[:, :, max_pad:max_pad + length])
    return out


class DilatedConvBlockPallas:
    """Mirrors DilatedConvBlock.forward (eval mode: dropout == identity)."""

    def __init__(self, in_channels, out_channels, num_layer=3, drate=0.5, *,
                 key):
        self.num_layer = num_layer
        self.cin = in_channels
        self.cout = out_channels
        self.dilations = tuple([1] + [2 ** i for i in range(1, num_layer)])
        # Contraction channel dim padded to a multiple of 16 (bf16 sublane
        # tile); padded weight columns are zero, so results are unchanged.
        self.cpad = _round_up(max(in_channels, out_channels), 16)

        self.ref_weights = []      # (w_oik f32 (Cout,Cin,K), b f32 (Cout,)) for ref
        w_flats, b_cols = [], []
        ci = in_channels
        for _ in range(num_layer):
            key, wk, bk = jax.random.split(key, 3)
            fan_in = ci * KSIZE
            bound = 1.0 / float(fan_in) ** 0.5
            # PyTorch Conv1d weight layout is (Cout, Cin, K).
            w_oik = jax.random.uniform(wk, (out_channels, ci, KSIZE),
                                       jnp.float32, -bound, bound)
            b = jax.random.uniform(bk, (out_channels,), jnp.float32,
                                   -bound, bound)
            self.ref_weights.append((w_oik, b))

            w_pad = jnp.pad(w_oik, ((0, 0), (0, self.cpad - ci), (0, 0)))
            # column index = k*cpad + c (tap-major), matching the im2col slab.
            w_flats.append(jnp.transpose(w_pad, (0, 2, 1)).reshape(
                out_channels, KSIZE * self.cpad))
            b_cols.append(b.reshape(out_channels, 1))
            ci = out_channels

        # All layers stacked -> single weight / bias inputs (O(1) pipeline bufs).
        self.w_stack = jnp.stack(w_flats).astype(jnp.bfloat16)  # (L, Cout, 7*cpad)
        self.b_stack = jnp.stack(b_cols)                        # (L, Cout, 1) f32

    def __call__(self, x_ncl, *, batch_tile=None):
        return fused_dilated_conv_block(
            x_ncl, self.w_stack, self.b_stack, self.dilations,
            cin=self.cin, cout=self.cout, cpad=self.cpad,
            batch_tile=batch_tile)


def _reference_forward(block, x_ncl):
    """Pure-JAX f32 reference (lax.conv_general_dilated) for correctness."""
    x = x_ncl
    for i, (w_oik, b) in enumerate(block.ref_weights):
        dilation = block.dilations[i]
        pad = dilation * (KSIZE // 2)
        y = jax.lax.conv_general_dilated(
            x, w_oik, window_strides=(1,), padding=[(pad, pad)],
            rhs_dilation=(dilation,),
            dimension_numbers=("NCH", "OIH", "NCH"))
        x = jnp.maximum(y + b[None, :, None], 0.0)
    return x


if __name__ == "__main__":
    key = jax.random.PRNGKey(0)
    key, xkey, pkey = jax.random.split(key, 3)

    # Small but tiling-representative shapes: batch 32 folds into lane-dense
    # slabs (bt=16 -> 640 lanes) while keeping 2 parallel grid steps.
    batch, in_channels, out_channels, length = 32, 4, 8, 16
    x = jax.random.normal(xkey, (batch, in_channels, length), jnp.float32)

    block = DilatedConvBlockPallas(in_channels, out_channels, num_layer=3,
                                   key=pkey)

    out = jax.block_until_ready(block(x))
    assert out.shape == (batch, out_channels, length), out.shape

    ref = _reference_forward(block, x)
    # bf16 matmul inputs / resident activations (f32 accumulation) across
    # 3 chained layers -> loosened tolerance vs the f32 reference.
    max_err = float(jnp.max(jnp.abs(out - ref)))
    assert jnp.allclose(out, ref, atol=7.5e-2, rtol=7.5e-2), max_err

    print("KERNEL_OK")
</pallas_src>

<mosaic_0001>
module attributes {stable_mosaic.version = 11 : i64} {
  func.func @_fused_block_kernel(%arg0: i32, %arg1: memref<1x4x640xbf16, #tpu.memory_space<vmem>>, %arg2: memref<3x8x112xbf16, #tpu.memory_space<vmem>>, %arg3: memref<3x8x1xf32, #tpu.memory_space<vmem>>, %arg4: memref<1x8x640xf32, #tpu.memory_space<vmem>>, %arg5: memref<16x664xbf16, #tpu.memory_space<vmem>>, %arg6: memref<112x640xbf16, #tpu.memory_space<vmem>>) attributes {dimension_semantics = [#tpu.dimension_semantics<parallel>], iteration_bounds = array<i64: 2>, scalar_prefetch = 0 : i64, scratch_operands = 2 : i64, tpu.core_type = #tpu.core_type<tc>, window_params = [{transform_indices = @transform_0, window_bounds = array<i64: 1, 4, 640>}, {pipeline_mode = #tpu.pipeline_mode<synchronous>, transform_indices = @transform_1, window_bounds = array<i64: 3, 8, 112>}, {pipeline_mode = #tpu.pipeline_mode<synchronous>, transform_indices = @transform_2, window_bounds = array<i64: 3, 8, 1>}, {transform_indices = @transform_3, window_bounds = array<i64: 1, 8, 640>}]} {
    %cst = arith.constant 0.000000e+00 : bf16
    %0 = vector.broadcast %cst : bf16 to vector<12x664xbf16>
    %c4 = arith.constant 4 : index
    %c0 = arith.constant 0 : index
    %1 = vector.load %arg5[%c4, %c0] : memref<16x664xbf16, #tpu.memory_space<vmem>>, vector<12x664xbf16>
    tpu.vector_store %arg5[%c4, %c0], %0 {strides = array<i32>} : memref<16x664xbf16, #tpu.memory_space<vmem>>, vector<12x664xbf16>,
    %cst_0 = arith.constant 0.000000e+00 : bf16
    %2 = vector.broadcast %cst_0 : bf16 to vector<4x12xbf16>
    %c0_1 = arith.constant 0 : index
    %c0_2 = arith.constant 0 : index
    %3 = vector.load %arg5[%c0_1, %c0_2] : memref<16x664xbf16, #tpu.memory_space<vmem>>, vector<4x12xbf16>
    tpu.vector_store %arg5[%c0_1, %c0_2], %2 {strides = array<i32>} : memref<16x664xbf16, #tpu.memory_space<vmem>>, vector<4x12xbf16>,
    %cst_3 = arith.constant 0.000000e+00 : bf16
    %4 = vector.broadcast %cst_3 : bf16 to vector<4x12xbf16>
    %c0_4 = arith.constant 0 : index
    %c652 = arith.constant 652 : index
    %5 = vector.load %arg5[%c0_4, %c652] : memref<16x664xbf16, #tpu.memory_space<vmem>>, vector<4x12xbf16>
    tpu.vector_store %arg5[%c0_4, %c652], %4 {strides = array<i32>} : memref<16x664xbf16, #tpu.memory_space<vmem>>, vector<4x12xbf16>,
    %c0_5 = arith.constant 0 : index
    %c0_6 = arith.constant 0 : index
    %c0_7 = arith.constant 0 : index
    %6 = vector.load %arg1[%c0_5, %c0_6, %c0_7] : memref<1x4x640xbf16, #tpu.memory_space<vmem>>, vector<1x4x640xbf16>
    %7 = vector.shape_cast %6 : vector<1x4x640xbf16> to vector<4x640xbf16>
    %c0_8 = arith.constant 0 : index
    %c12 = arith.constant 12 : index
    %8 = vector.load %arg5[%c0_8, %c12] : memref<16x664xbf16, #tpu.memory_space<vmem>>, vector<4x640xbf16>
    tpu.vector_store %arg5[%c0_8, %c12], %7 {strides = array<i32>} : memref<16x664xbf16, #tpu.memory_space<vmem>>, vector<4x640xbf16>,
    %9 = tpu.iota {dimensions = array<i32: 1>} : vector<1x640xi32>
    %c40_i32 = arith.constant 40 : i32
    %c0_i32 = arith.constant 0 : i32
    %10 = arith.cmpi eq, %c40_i32, %c0_i32 : i32
    %c1_i32 = arith.constant 1 : i32
    %11 = arith.select %10, %c1_i32, %c40_i32 : i32
    %12 = vector.broadcast %11 : i32 to vector<1x640xi32>
    %13 = arith.remsi %9, %12 : vector<1x640xi32>
    %c0_i32_9 = arith.constant 0 : i32
    %14 = vector.broadcast %c0_i32_9 : i32 to vector<1x640xi32>
    %15 = arith.cmpi ne, %13, %14 : vector<1x640xi32>
    %c0_i32_10 = arith.constant 0 : i32
    %16 = vector.broadcast %c0_i32_10 : i32 to vector<1x640xi32>
    %17 = arith.cmpi slt, %13, %16 : vector<1x640xi32>
    %c0_i32_11 = arith.constant 0 : i32
    %18 = arith.cmpi slt, %11, %c0_i32_11 : i32
    %19 = vector.broadcast %18 : i1 to vector<1x640xi1>
    %20 = vector.broadcast %19 : vector<1x640xi1> to vector<1x640xi1>
    %21 = arith.xori %17, %20 : vector<1x640xi1>
    %22 = arith.andi %21, %15 : vector<1x640xi1>
    %23 = vector.broadcast %11 : i32 to vector<1x640xi32>
    %24 = arith.addi %13, %23 : vector<1x640xi32>
    %25 = arith.select %22, %24, %13 : vector<1x640xi1>, vector<1x640xi32>
    %c12_i32 = arith.constant 12 : i32
    %26 = vector.broadcast %c12_i32 : i32 to vector<1x640xi32>
    %27 = arith.cmpi sge, %25, %26 : vector<1x640xi32>
    %c28_i32 = arith.constant 28 : i32
    %28 = vector.broadcast %c28_i32 : i32 to vector<1x640xi32>
    %29 = arith.cmpi slt, %25, %28 : vector<1x640xi32>
    %30 = arith.andi %27, %29 : vector<1x640xi1>
    %c0_12 = arith.constant 0 : index
    %c9 = arith.constant 9 : index
    %31 = vector.load %arg5[%c0_12, %c9] : memref<16x664xbf16, #tpu.memory_space<vmem>>, vector<16x640xbf16>
    %c0_13 = arith.constant 0 : index
    %c0_14 = arith.constant 0 : index
    %32 = vector.load %arg6[%c0_13, %c0_14] : memref<112x640xbf16, #tpu.memory_space<vmem>>, vector<16x640xbf16>
    tpu.vector_store %arg6[%c0_13, %c0_14], %31 {strides = array<i32>} : memref<112x640xbf16, #tpu.memory_space<vmem>>, vector<16x640xbf16>,
    %c0_15 = arith.constant 0 : index
    %c10 = arith.constant 10 : index
    %33 = vector.load %arg5[%c0_15, %c10] : memref<16x664xbf16, #tpu.memory_space<vmem>>, vector<16x640xbf16>
    %c16 = arith.constant 16 : index
    %c0_16 = arith.constant 0 : index
    %34 = vector.load %arg6[%c16, %c0_16] : memref<112x640xbf16, #tpu.memory_space<vmem>>, vector<16x640xbf16>
    tpu.vector_store %arg6[%c16, %c0_16], %33 {strides = array<i32>} : memref<112x640xbf16, #tpu.memory_space<vmem>>, vector<16x640xbf16>,
    %c0_17 = arith.constant 0 : index
    %c11 = arith.constant 11 : index
    %35 = vector.load %arg5[%c0_17, %c11] : memref<16x664xbf16, #tpu.memory_space<vmem>>, vector<16x640xbf16>
    %c32 = arith.constant 32 : index
    %c0_18 = arith.constant 0 : index
    %36 = vector.load %arg6[%c32, %c0_18] : memref<112x640xbf16, #tpu.memory_space<vmem>>, vector<16x640xbf16>
    tpu.vector_store %arg6[%c32, %c0_18], %35 {strides = array<i32>} : memref<112x640xbf16, #tpu.memory_space<vmem>>, vector<16x640xbf16>,
    %c0_19 = arith.constant 0 : index
    %c12_20 = arith.constant 12 : index
    %37 = vector.load %arg5[%c0_19, %c12_20] : memref<16x664xbf16, #tpu.memory_space<vmem>>, vector<16x640xbf16>
    %c48 = arith.constant 48 : index
    %c0_21 = arith.constant 0 : index
    %38 = vector.load %arg6[%c48, %c0_21] : memref<112x640xbf16, #tpu.memory_space<vmem>>, vector<16x640xbf16>
    tpu.vector_store %arg6[%c48, %c0_21], %37 {strides = array<i32>} : memref<112x640xbf16, #tpu.memory_space<vmem>>, vector<16x640xbf16>,
    %c0_22 = arith.constant 0 : index
    %c13 = arith.constant 13 : index
    %39 = vector.load %arg5[%c0_22, %c13] : memref<16x664xbf16, #tpu.memory_space<vmem>>, vector<16x640xbf16>
    %c64 = arith.constant 64 : index
    %c0_23 = arith.constant 0 : index
    %40 = vector.load %arg6[%c64, %c0_23] : memref<112x640xbf16, #tpu.memory_space<vmem>>, vector<16x640xbf16>
    tpu.vector_store %arg6[%c64, %c0_23], %39 {strides = array<i32>} : memref<112x640xbf16, #tpu.memory_space<vmem>>, vector<16x640xbf16>,
    %c0_24 = arith.constant 0 : index
    %c14 = arith.constant 14 : index
    %41 = vector.load %arg5[%c0_24, %c14] : memref<16x664xbf16, #tpu.memory_space<vmem>>, vector<16x640xbf16>
    %c80 = arith.constant 80 : index
    %c0_25 = arith.constant 0 : index
    %42 = vector.load %arg6[%c80, %c0_25] : memref<112x640xbf16, #tpu.memory_space<vmem>>, vector<16x640xbf16>
    tpu.vector_store %arg6[%c80, %c0_25], %41 {strides = array<i32>} : memref<112x640xbf16, #tpu.memory_space<vmem>>, vector<16x640xbf16>,
    %c0_26 = arith.constant 0 : index
    %c15 = arith.constant 15 : index
    %43 = vector.load %arg5[%c0_26, %c15] : memref<16x664xbf16, #tpu.memory_space<vmem>>, vector<16x640xbf16>
    %c96 = arith.constant 96 : index
    %c0_27 = arith.constant 0 : index
    %44 = vector.load %arg6[%c96, %c0_27] : memref<112x640xbf16, #tpu.memory_space<vmem>>, vector<16x640xbf16>
    tpu.vector_store %arg6[%c96, %c0_27], %43 {strides = array<i32>} : memref<112x640xbf16, #tpu.memory_space<vmem>>, vector<16x640xbf16>,
    %c0_28 = arith.constant 0 : index
    %c0_29 = arith.constant 0 : index
    %c0_30 = arith.constant 0 : index
    %45 = vector.load %arg2[%c0_28, %c0_29, %c0_30] : memref<3x8x112xbf16, #tpu.memory_space<vmem>>, vector<1x8x112xbf16>
    %46 = vector.shape_cast %45 : vector<1x8x112xbf16> to vector<8x112xbf16>
    %c0_31 = arith.constant 0 : index
    %c0_32 = arith.constant 0 : index
    %47 = vector.load %arg6[%c0_31, %c0_32] : memref<112x640xbf16, #tpu.memory_space<vmem>>, vector<112x640xbf16>
    %cst_33 = arith.constant dense<0.000000e+00> : vector<8x640xf32>
    %48 = tpu.matmul %46, %47, %cst_33 {dimension_numbers = #tpu.dot_dimension_numbers<[1], [0], [0], [1], [0, 0, 1, 1], [], []>} : vector<8x112xbf16>, vector<112x640xbf16>, vector<8x640xf32> -> vector<8x640xf32>
    %c0_34 = arith.constant 0 : index
    %c0_35 = arith.constant 0 : index
    %c0_36 = arith.constant 0 : index
    %49 = vector.load %arg3[%c0_34, %c0_35, %c0_36] : memref<3x8x1xf32, #tpu.memory_space<vmem>>, vector<1x8x1xf32>
    %50 = vector.shape_cast %49 : vector<1x8x1xf32> to vector<8x1xf32>
    %51 = vector.broadcast %50 : vector<8x1xf32> to vector<8x640xf32>
    %52 = arith.addf %48, %51 : vector<8x640xf32>
    %cst_37 = arith.constant 0.000000e+00 : f32
    %53 = vector.broadcast %cst_37 : f32 to vector<8x640xf32>
    %54 = arith.maximumf %52, %53 : vector<8x640xf32>
    %cst_38 = arith.constant 0.000000e+00 : f32
    %55 = vector.shape_cast %30 : vector<1x640xi1> to vector<1x640xi1>
    %56 = vector.broadcast %55 : vector<1x640xi1> to vector<8x640xi1>
    %57 = vector.broadcast %cst_38 : f32 to vector<8x640xf32>
    %58 = arith.select %56, %54, %57 : vector<8x640xi1>, vector<8x640xf32>
    %59 = arith.truncf %58 : vector<8x640xf32> to vector<8x640xbf16>
    %c0_39 = arith.constant 0 : index
    %c12_40 = arith.constant 12 : index
    %60 = vector.load %arg5[%c0_39, %c12_40] : memref<16x664xbf16, #tpu.memory_space<vmem>>, vector<8x640xbf16>
    tpu.vector_store %arg5[%c0_39, %c12_40], %59 {strides = array<i32>} : memref<16x664xbf16, #tpu.memory_space<vmem>>, vector<8x640xbf16>,
    %c0_41 = arith.constant 0 : index
    %c6 = arith.constant 6 : index
    %61 = vector.load %arg5[%c0_41, %c6] : memref<16x664xbf16, #tpu.memory_space<vmem>>, vector<16x640xbf16>
    %c0_42 = arith.constant 0 : index
    %c0_43 = arith.constant 0 : index
    %62 = vector.load %arg6[%c0_42, %c0_43] : memref<112x640xbf16, #tpu.memory_space<vmem>>, vector<16x640xbf16>
    tpu.vector_store %arg6[%c0_42, %c0_43], %61 {strides = array<i32>} : memref<112x640xbf16, #tpu.memory_space<vmem>>, vector<16x640xbf16>,
    %c0_44 = arith.constant 0 : index
    %c8 = arith.constant 8 : index
    %63 = vector.load %arg5[%c0_44, %c8] : memref<16x664xbf16, #tpu.memory_space<vmem>>, vector<16x640xbf16>
    %c16_45 = arith.constant 16 : index
    %c0_46 = arith.constant 0 : index
    %64 = vector.load %arg6[%c16_45, %c0_46] : memref<112x640xbf16, #tpu.memory_space<vmem>>, vector<16x640xbf16>
    tpu.vector_store %arg6[%c16_45, %c0_46], %63 {strides = array<i32>} : memref<112x640xbf16, #tpu.memory_space<vmem>>, vector<16x640xbf16>,
    %c0_47 = arith.constant 0 : index
    %c10_48 = arith.constant 10 : index
    %65 = vector.load %arg5[%c0_47, %c10_48] : memref<16x664xbf16, #tpu.memory_space<vmem>>, vector<16x640xbf16>
    %c32_49 = arith.constant 32 : index
    %c0_50 = arith.constant 0 : index
    %66 = vector.load %arg6[%c32_49, %c0_50] : memref<112x640xbf16, #tpu.memory_space<vmem>>, vector<16x640xbf16>
    tpu.vector_store %arg6[%c32_49, %c0_50], %65 {strides = array<i32>} : memref<112x640xbf16, #tpu.memory_space<vmem>>, vector<16x640xbf16>,
    %c0_51 = arith.constant 0 : index
    %c12_52 = arith.constant 12 : index
    %67 = vector.load %arg5[%c0_51, %c12_52] : memref<16x664xbf16, #tpu.memory_space<vmem>>, vector<16x640xbf16>
    %c48_53 = arith.constant 48 : index
    %c0_54 = arith.constant 0 : index
    %68 = vector.load %arg6[%c48_53, %c0_54] : memref<112x640xbf16, #tpu.memory_space<vmem>>, vector<16x640xbf16>
    tpu.vector_store %arg6[%c48_53, %c0_54], %67 {strides = array<i32>} : memref<112x640xbf16, #tpu.memory_space<vmem>>, vector<16x640xbf16>,
    %c0_55 = arith.constant 0 : index
    %c14_56 = arith.constant 14 : index
    %69 = vector.load %arg5[%c0_55, %c14_56] : memref<16x664xbf16, #tpu.memory_space<vmem>>, vector<16x640xbf16>
    %c64_57 = arith.constant 64 : index
    %c0_58 = arith.constant 0 : index
    %70 = vector.load %arg6[%c64_57, %c0_58] : memref<112x640xbf16, #tpu.memory_space<vmem>>, vector<16x640xbf16>
    tpu.vector_store %arg6[%c64_57, %c0_58], %69 {strides = array<i32>} : memref<112x640xbf16, #tpu.memory_space<vmem>>, vector<16x640xbf16>,
    %c0_59 = arith.constant 0 : index
    %c16_60 = arith.constant 16 : index
    %71 = vector.load %arg5[%c0_59, %c16_60] : memref<16x664xbf16, #tpu.memory_space<vmem>>, vector<16x640xbf16>
    %c80_61 = arith.constant 80 : index
    %c0_62 = arith.constant 0 : index
    %72 = vector.load %arg6[%c80_61, %c0_62] : memref<112x640xbf16, #tpu.memory_space<vmem>>, vector<16x640xbf16>
    tpu.vector_store %arg6[%c80_61, %c0_62], %71 {strides = array<i32>} : memref<112x640xbf16, #tpu.memory_space<vmem>>, vector<16x640xbf16>,
    %c0_63 = arith.constant 0 : index
    %c18 = arith.constant 18 : index
    %73 = vector.load %arg5[%c0_63, %c18] : memref<16x664xbf16, #tpu.memory_space<vmem>>, vector<16x640xbf16>
    %c96_64 = arith.constant 96 : index
    %c0_65 = arith.constant 0 : index
    %74 = vector.load %arg6[%c96_64, %c0_65] : memref<112x640xbf16, #tpu.memory_space<vmem>>, vector<16x640xbf16>
    tpu.vector_store %arg6[%c96_64, %c0_65], %73 {strides = array<i32>} : memref<112x640xbf16, #tpu.memory_space<vmem>>, vector<16x640xbf16>,
    %c1 = arith.constant 1 : index
    %c0_66 = arith.constant 0 : index
    %c0_67 = arith.constant 0 : index
    %75 = vector.load %arg2[%c1, %c0_66, %c0_67] : memref<3x8x112xbf16, #tpu.memory_space<vmem>>, vector<1x8x112xbf16>
    %76 = vector.shape_cast %75 : vector<1x8x112xbf16> to vector<8x112xbf16>
    %c0_68 = arith.constant 0 : index
    %c0_69 = arith.constant 0 : index
    %77 = vector.load %arg6[%c0_68, %c0_69] : memref<112x640xbf16, #tpu.memory_space<vmem>>, vector<112x640xbf16>
    %cst_70 = arith.constant dense<0.000000e+00> : vector<8x640xf32>
    %78 = tpu.matmul %76, %77, %cst_70 {dimension_numbers = #tpu.dot_dimension_numbers<[1], [0], [0], [1], [0, 0, 1, 1], [], []>} : vector<8x112xbf16>, vector<112x640xbf16>, vector<8x640xf32> -> vector<8x640xf32>
    %c1_71 = arith.constant 1 : index
    %c0_72 = arith.constant 0 : index
    %c0_73 = arith.constant 0 : index
    %79 = vector.load %arg3[%c1_71, %c0_72, %c0_73] : memref<3x8x1xf32, #tpu.memory_space<vmem>>, vector<1x8x1xf32>
    %80 = vector.shape_cast %79 : vector<1x8x1xf32> to vector<8x1xf32>
    %81 = vector.broadcast %80 : vector<8x1xf32> to vector<8x640xf32>
    %82 = arith.addf %78, %81 : vector<8x640xf32>
    %cst_74 = arith.constant 0.000000e+00 : f32
    %83 = vector.broadcast %cst_74 : f32 to vector<8x640xf32>
    %84 = arith.maximumf %82, %83 : vector<8x640xf32>
    %cst_75 = arith.constant 0.000000e+00 : f32
    %85 = vector.shape_cast %30 : vector<1x640xi1> to vector<1x640xi1>
    %86 = vector.broadcast %85 : vector<1x640xi1> to vector<8x640xi1>
    %87 = vector.broadcast %cst_75 : f32 to vector<8x640xf32>
    %88 = arith.select %86, %84, %87 : vector<8x640xi1>, vector<8x640xf32>
    %89 = arith.truncf %88 : vector<8x640xf32> to vector<8x640xbf16>
    %c0_76 = arith.constant 0 : index
    %c12_77 = arith.constant 12 : index
    %90 = vector.load %arg5[%c0_76, %c12_77] : memref<16x664xbf16, #tpu.memory_space<vmem>>, vector<8x640xbf16>
    tpu.vector_store %arg5[%c0_76, %c12_77], %89 {strides = array<i32>} : memref<16x664xbf16, #tpu.memory_space<vmem>>, vector<8x640xbf16>,
    %c0_78 = arith.constant 0 : index
    %c0_79 = arith.constant 0 : index
    %91 = vector.load %arg5[%c0_78, %c0_79] : memref<16x664xbf16, #tpu.memory_space<vmem>>, vector<16x640xbf16>
    %c0_80 = arith.constant 0 : index
    %c0_81 = arith.constant 0 : index
    %92 = vector.load %arg6[%c0_80, %c0_81] : memref<112x640xbf16, #tpu.memory_space<vmem>>, vector<16x640xbf16>
    tpu.vector_store %arg6[%c0_80, %c0_81], %91 {strides = array<i32>} : memref<112x640xbf16, #tpu.memory_space<vmem>>, vector<16x640xbf16>,
    %c0_82 = arith.constant 0 : index
    %c4_83 = arith.constant 4 : index
    %93 = vector.load %arg5[%c0_82, %c4_83] : memref<16x664xbf16, #tpu.memory_space<vmem>>, vector<16x640xbf16>
    %c16_84 = arith.constant 16 : index
    %c0_85 = arith.constant 0 : index
    %94 = vector.load %arg6[%c16_84, %c0_85] : memref<112x640xbf16, #tpu.memory_space<vmem>>, vector<16x640xbf16>
    tpu.vector_store %arg6[%c16_84, %c0_85], %93 {strides = array<i32>} : memref<112x640xbf16, #tpu.memory_space<vmem>>, vector<16x640xbf16>,
    %c0_86 = arith.constant 0 : index
    %c8_87 = arith.constant 8 : index
    %95 = vector.load %arg5[%c0_86, %c8_87] : memref<16x664xbf16, #tpu.memory_space<vmem>>, vector<16x640xbf16>
    %c32_88 = arith.constant 32 : index
    %c0_89 = arith.constant 0 : index
    %96 = vector.load %arg6[%c32_88, %c0_89] : memref<112x640xbf16, #tpu.memory_space<vmem>>, vector<16x640xbf16>
    tpu.vector_store %arg6[%c32_88, %c0_89], %95 {strides = array<i32>} : memref<112x640xbf16, #tpu.memory_space<vmem>>, vector<16x640xbf16>,
    %c0_90 = arith.constant 0 : index
    %c12_91 = arith.constant 12 : index
    %97 = vector.load %arg5[%c0_90, %c12_91] : memref<16x664xbf16, #tpu.memory_space<vmem>>, vector<16x640xbf16>
    %c48_92 = arith.constant 48 : index
    %c0_93 = arith.constant 0 : index
    %98 = vector.load %arg6[%c48_92, %c0_93] : memref<112x640xbf16, #tpu.memory_space<vmem>>, vector<16x640xbf16>
    tpu.vector_store %arg6[%c48_92, %c0_93], %97 {strides = array<i32>} : memref<112x640xbf16, #tpu.memory_space<vmem>>, vector<16x640xbf16>,
    %c0_94 = arith.constant 0 : index
    %c16_95 = arith.constant 16 : index
    %99 = vector.load %arg5[%c0_94, %c16_95] : memref<16x664xbf16, #tpu.memory_space<vmem>>, vector<16x640xbf16>
    %c64_96 = arith.constant 64 : index
    %c0_97 = arith.constant 0 : index
    %100 = vector.load %arg6[%c64_96, %c0_97] : memref<112x640xbf16, #tpu.memory_space<vmem>>, vector<16x640xbf16>
    tpu.vector_store %arg6[%c64_96, %c0_97], %99 {strides = array<i32>} : memref<112x640xbf16, #tpu.memory_space<vmem>>, vector<16x640xbf16>,
    %c0_98 = arith.constant 0 : index
    %c20 = arith.constant 20 : index
    %101 = vector.load %arg5[%c0_98, %c20] : memref<16x664xbf16, #tpu.memory_space<vmem>>, vector<16x640xbf16>
    %c80_99 = arith.constant 80 : index
    %c0_100 = arith.constant 0 : index
    %102 = vector.load %arg6[%c80_99, %c0_100] : memref<112x640xbf16, #tpu.memory_space<vmem>>, vector<16x640xbf16>
    tpu.vector_store %arg6[%c80_99, %c0_100], %101 {strides = array<i32>} : memref<112x640xbf16, #tpu.memory_space<vmem>>, vector<16x640xbf16>,
    %c0_101 = arith.constant 0 : index
    %c24 = arith.constant 24 : index
    %103 = vector.load %arg5[%c0_101, %c24] : memref<16x664xbf16, #tpu.memory_space<vmem>>, vector<16x640xbf16>
    %c96_102 = arith.constant 96 : index
    %c0_103 = arith.constant 0 : index
    %104 = vector.load %arg6[%c96_102, %c0_103] : memref<112x640xbf16, #tpu.memory_space<vmem>>, vector<16x640xbf16>
    tpu.vector_store %arg6[%c96_102, %c0_103], %103 {strides = array<i32>} : memref<112x640xbf16, #tpu.memory_space<vmem>>, vector<16x640xbf16>,
    %c2 = arith.constant 2 : index
    %c0_104 = arith.constant 0 : index
    %c0_105 = arith.constant 0 : index
    %105 = vector.load %arg2[%c2, %c0_104, %c0_105] : memref<3x8x112xbf16, #tpu.memory_space<vmem>>, vector<1x8x112xbf16>
    %106 = vector.shape_cast %105 : vector<1x8x112xbf16> to vector<8x112xbf16>
    %c0_106 = arith.constant 0 : index
    %c0_107 = arith.constant 0 : index
    %107 = vector.load %arg6[%c0_106, %c0_107] : memref<112x640xbf16, #tpu.memory_space<vmem>>, vector<112x640xbf16>
    %cst_108 = arith.constant dense<0.000000e+00> : vector<8x640xf32>
    %108 = tpu.matmul %106, %107, %cst_108 {dimension_numbers = #tpu.dot_dimension_numbers<[1], [0], [0], [1], [0, 0, 1, 1], [], []>} : vector<8x112xbf16>, vector<112x640xbf16>, vector<8x640xf32> -> vector<8x640xf32>
    %c2_109 = arith.constant 2 : index
    %c0_110 = arith.constant 0 : index
    %c0_111 = arith.constant 0 : index
    %109 = vector.load %arg3[%c2_109, %c0_110, %c0_111] : memref<3x8x1xf32, #tpu.memory_space<vmem>>, vector<1x8x1xf32>
    %110 = vector.shape_cast %109 : vector<1x8x1xf32> to vector<8x1xf32>
    %111 = vector.broadcast %110 : vector<8x1xf32> to vector<8x640xf32>
    %112 = arith.addf %108, %111 : vector<8x640xf32>
    %cst_112 = arith.constant 0.000000e+00 : f32
    %113 = vector.broadcast %cst_112 : f32 to vector<8x640xf32>
    %114 = arith.maximumf %112, %113 : vector<8x640xf32>
    %cst_113 = arith.constant 0.000000e+00 : f32
    %115 = vector.shape_cast %30 : vector<1x640xi1> to vector<1x640xi1>
    %116 = vector.broadcast %115 : vector<1x640xi1> to vector<8x640xi1>
    %117 = vector.broadcast %cst_113 : f32 to vector<8x640xf32>
    %118 = arith.select %116, %114, %117 : vector<8x640xi1>, vector<8x640xf32>
    %c0_114 = arith.constant 0 : index
    %c0_115 = arith.constant 0 : index
    %c0_116 = arith.constant 0 : index
    %119 = vector.load %arg4[%c0_114, %c0_115, %c0_116] : memref<1x8x640xf32, #tpu.memory_space<vmem>>, vector<1x8x640xf32>
    %120 = vector.shape_cast %119 : vector<1x8x640xf32> to vector<8x640xf32>
    %121 = vector.shape_cast %118 : vector<8x640xf32> to vector<1x8x640xf32>
    tpu.vector_store %arg4[%c0_114, %c0_115, %c0_116], %121 {strides = array<i32>} : memref<1x8x640xf32, #tpu.memory_space<vmem>>, vector<1x8x640xf32>,
    return
  }
  func.func @transform_0(%arg0: i32) -> (i32, i32, i32) {
    %c0_i32 = arith.constant 0 : i32
    %c0_i32_0 = arith.constant 0 : i32
    %c0_i32_1 = arith.constant 0 : i32
    return %arg0, %c0_i32, %c0_i32_0 : i32, i32, i32
  }
  func.func @transform_1(%arg0: i32) -> (i32, i32, i32) {
    %c0_i32 = arith.constant 0 : i32
    %c0_i32_0 = arith.constant 0 : i32
    %c0_i32_1 = arith.constant 0 : i32
    %c0_i32_2 = arith.constant 0 : i32
    return %c0_i32, %c0_i32_0, %c0_i32_1 : i32, i32, i32
  }
  func.func @transform_2(%arg0: i32) -> (i32, i32, i32) {
    %c0_i32 = arith.constant 0 : i32
    %c0_i32_0 = arith.constant 0 : i32
    %c0_i32_1 = arith.constant 0 : i32
    %c0_i32_2 = arith.constant 0 : i32
    return %c0_i32, %c0_i32_0, %c0_i32_1 : i32, i32, i32
  }
  func.func @transform_3(%arg0: i32) -> (i32, i32, i32) {
    %c0_i32 = arith.constant 0 : i32
    %c0_i32_0 = arith.constant 0 : i32
    %c0_i32_1 = arith.constant 0 : i32
    return %arg0, %c0_i32, %c0_i32_0 : i32, i32, i32
  }
}

</mosaic_0001>

<bundles_post_ra>
// kernel: tpu_custom_call.1
= control target key start
LH: loop header
LB: loop body
LE: loop exit
PB: predicated region body
PF: predicated region fallthrough
CT: control target
= control target key end

     0   :  { %8 = vsyncpa [#allocation5], 0  ;;  %s4274_s0 = inlined_call_operand.vmem [shape: bf16[2,4,640], index: 0, kind: input, shape index: {}]   ;;  %s4275_s1 = inlined_call_operand.hbm [shape: bf16[3,8,112], index: 1, kind: input, shape index: {}]   ;;  %s4276_s2 = inlined_call_operand.vmem [shape: f32[3,8,1], index: 2, kind: input, shape index: {}]   ;;  %s4277_s3 = inlined_call_operand.hbm [shape: f32[2,8,640], index: 3, kind: output, shape index: {}]  }
   0x1   :  { %9 = vsyncpa [#allocation6], 0 }
   0x2   :  { %11 = vsyncpa [#allocation6 + $0x1], 0  ;;  %s3169_s12 = smov 0   ;;  %s3171_s13 = smov 0  }
   0x3   :  { %s3173_s14 = smov 0   ;;  %s3175_s15 = smov 0  }
   0x4 LB: > { %s3190_s16 = sadd.s32 4294967295, %s3124_s15   ;;  %s2707_s17 = sadd.s32 4294967294, %s3124_s15   ;;  %s3124_s15 = sphi %s3175_s15, %s4403_s15   ;;  %s3120_s14 = sphi %s3173_s14, %s4402_s14   ;;  %s3116_s13 = sphi %s3171_s13, %s4401_s13   ;;  %s3112_s12 = sphi %s3169_s12, %s4400_s12  }
   0x5   : > { %s3194_s18 = sadd.s32 1, %s3124_s15   ;;  %s92_s19 = sadd.s32 1, %s3120_s14 }
   0x6   : > { %s89_s20 = ssub.s32 %s3124_s15, %s3194_s18  ;;  %p102_p0 = scmp.ne.s32.totalorder %s3120_s14, %s3116_s13 }
   0x7   : > { %p90_p1 = scmp.eq.s32.totalorder %s89_s20, 0  ;;  %p103_p2 = scmp.eq.s32.totalorder %s3190_s16, 1 }
   0x8   : > { %p108_p3 = scmp.ne.s32.totalorder %s3116_s13, %s3112_s12  ;;  %p109_p4 = scmp.eq.s32.totalorder %s2707_s17, 1 }
   0x9   : > { %s3205_s21 = scalar_select %p90_p1, %s3120_s14, %s92_s19  }
   0xa   : > { %p3207_p5 = por %p103_p2, %p102_p0  ;;  %p3211_p6 = por %p109_p4, %p108_p3 }
   0xb   : > { %p2708_p7 = scmp.ge.s32.totalorder %s3124_s15, 1  ;;  %p116_p8 = scmp.lt.s32.totalorder %s3124_s15, 3 }
   0xc   : > { %s4287_s23 = scalar_select %p3211_p6, 1, 0 }
   0xd   : > { %p2951_p9 = scmp.eq.s32.totalorder %s3190_s16, 0  ;;  %p3218_p10 = pnand %p2708_p7, %p116_p8 }
   0xe   : > { %s3126_s25 = smov [#allocation4]  }
   0xf   : > { %s128_s26 = sshll.u32 %s3126_s25, 4  ;;  %p2943_p11 = pneg %p3218_p10  ;;  %s129_s26 = int_to_ptr.vmem [resolvable:$true] %s128_s26 }
  0x10   : > { %s3045_s27 = scalar_lea.vmem %s129_s26, 192  ;;  %p3053_p3 = scmp.lt.s32.totalorder %s129_s26, %s129_s26 }
  0x11   : > { %p2944_p12 = pnand %p2951_p9, %p2943_p11  ;;  %p3046_p0 = scmp.ne.s32.totalorder %s129_s26, %s3045_s27 }
  0x12   : > { %p3054_p4 = scmp.lt.s32.totalorder %s3045_s27, %s3045_s27 }
  0x13   : > { %p3036_p13 = pneg %p2944_p12 }
  0x14   : > { %p3055_p6 = por %p3054_p4, %p3053_p3 }
  0x15   : > { %p3048_p1 = pnand %p3046_p0, %p3036_p13 }
  0x17   : > { %p3049_p2 = pneg %p3048_p1 }
  0x19   : > { %p3056_p7 = pnand %p3055_p6, %p3049_p2 }
  0x1b   : > { %3059 = shalt.err (!%p3056_p7)
}
  0x1c   : > { %s3127_s28 = smov 64   ;;  %s3128_s29 = smov 4  }
  0x1d   : > { %2946 = dma.hbm_to_vmem [thread:$0]  (!%p2944_p12), %s4275_s1, 192, %s129_s26, [#allocation5], %s3127_s28, %s3127_s28, %s3128_s29  }
  0x1e   : > { %155 = sbr.rel (%p3218_p10) target bundleno = 1559 (0x617), region = 32 }
  0x23   : > { %3103 = dma.done.wait (%p2951_p9), [#allocation5], 192  }
  0x24   : > { %3105 = vsyncadd (%p2951_p9), [#allocation5], 4294967104  ;;  %p179_p8 = scmp.lt.s32.totalorder %s3190_s16, 1  ;;  %v209_v0 = vlaneseq  ;;  %v3129_v1 = vmov 1983009808   ;;  %vm197_vm0 = vcmask 91136  }
  0x25   : > { %v207_v2 = vunpack.c.l.s4 %v3129_v1  ;;  %v3130_v4 = vmov 0   ;;  %vm199_vm1 = vcmask 189536   ;;  %vm187_vm2 = vcmask 1043458   ;;  %s3131_s10 = smov 12   ;;  %s3132_s11 = smov 113   ;;  %v770_v27 = vld [vmem:[%s4276_s2] sm:$0xff] }
  0x26   : > { %s180_s5 = scalar_select %p179_p8, %s3190_s16, 1  ;;  %v210_v3 = vshrl.u32 %v209_v0, 7  ;;  %191 = vst [vmem:[#allocation2 + $0x18] sm:$0xff] %v3130_v4  ;;  %185 = vst [vmem:[#allocation2] sm:$0xcc] %v3130_v4  ;;  %994 = vmatprep.mubr.bf16.mxu0 %v3130_v4  ;;  %1035 = vmatprep.mubr.bf16.mxu1 %v3130_v4  ;;  %vm188_vm3 = vcmask 195590  }
  0x27   : > { %186 = vst [vmem:[#allocation2 + $0x8] sm:$0xcc] %v3130_v4  ;;  %198 = vst.msk [vmem:[#allocation2] sm:$0x3] %vm197_vm0, %v3130_v4  ;;  %v208_v5 = vunpack.c.0.s8 %v207_v2  ;;  %3008 = vset.pattern.permute.xlu1 %v3130_v4  ;;  %3009 = vset.pattern.permute.xlu0 %v3130_v4  ;;  %s3133_s17 = smov 114   ;;  %s3134_s19 = smov 115  }
  0x28   : > { %s2925_s6 = smul.u32 10, %s180_s5  ;;  %200 = vst.msk [vmem:[#allocation2 + $0x14] sm:$0x3] %vm199_vm1, %v3130_v4  ;;  %vm189_vm4 = vmor %vm188_vm3, %vm187_vm2  ;;  %s3135_s20 = smov 116   ;;  %vm4284_vm5 = vcmask 1043456   ;;  %vm194_vm6 = vcmask 195588  }
  0x29   : > { %v211_v6 = vsub.s32 %v208_v5, %v210_v3  ;;  %190 = vst.msk [vmem:[#allocation2 + $0x10] sm:$0xcc] %vm189_vm4, %v3130_v4  ;;  %s3136_s24 = smov 117   ;;  %s3137_s25 = smov 118   ;;  %vm195_vm7 = vmor %vm194_vm6, %vm4284_vm5  ;;  %vm246_vm8 = vcmask 1041504   ;;  %vm247_vm9 = vcmask 1045508  }
  0x2a   : > { %s183_s9 = scalar_lea.vmem %s4274_s0, %s2925_s6  ;;  %196 = vst.msk [vmem:[#allocation2 + $0x28] sm:$0xff] %vm195_vm7, %v3130_v4  ;;  %s3138_s26 = smov 119   ;;  %vm4285_vm10 = vcmask 97280   ;;  %vm248_vm11 = vmor %vm247_vm9, %vm246_vm8  ;;  %vm251_vm12 = vcmask 1041408   ;;  %vm252_vm13 = vcmask 95236   ;;  %vm705_vm15 = vcmask 924672  }
  0x2b   : > { %v201_v7 = vld [vmem:[%s183_s9] sm:$0xff]  ;;  %v2714_v8 = vld.sshfl [vmem:[%s183_s9 + $0x8] sm:$0x3 pattern:$0x76325410]  ;;  %vm253_vm14 = vmor %vm252_vm13, %vm251_vm12  ;;  %vm4282_vm0 = vcmask 932864  }
  0x2c   : > { %v212_v9 = vrot.slane %v201_v7, %v211_v6  ;;  %v205_v10 = vcombine.high %v201_v7, %v201_v7  ;;  %231 = vrot.lane.b32.xlu1 %v2714_v8, %s3131_s10  ;;  %vm599_vm1 = vcmask 941056   ;;  %vm4281_vm2 = vcmask 949248   ;;  %s3141_s29 = smov 110   ;;  %s3142_s30 = smov 112  }
  0x2d   : > { %vm493_vm3 = vcmask 957440   ;;  %vm4280_vm4 = vcmask 965632   ;;  %vm387_vm6 = vcmask 973824   ;;  %vm4283_vm7 = vcmask 916480   ;;  %s3143_s4 = smov 120   ;;  %s3144_s5 = smov 122  }
  0x2e   : > { %227 = vrot.lane.b32.xlu0 %v212_v9, %s3131_s10  ;;  %v219_v11 = vrot.slane %v205_v10, %v211_v6  ;;  %vm4278_vm8 = vmmov 0   ;;  %s3145_s8 = smov 104   ;;  %s3146_s9 = smov 108  }
  0x30   : > { %692 = vrot.lane.b32.xlu1 %v3130_v4, %s3132_s11 }
  0x31   : > { %v3304_v26 = vld [vmem:[#allocation2 + $0x28] sm:$0xff] }
  0x32   : > { %229 = vrot.lane.b32.xlu0 %v219_v11, %s3131_s10 }
  0x34   : > { %639 = vrot.lane.b32.xlu1 %v3130_v4, %s3133_s17 }
  0x36   : > { %694 = vrot.lane.b32.xlu0 %v3130_v4, %s3132_s11 }
  0x38   : > { %586 = vrot.lane.b32.xlu1 %v3130_v4, %s3134_s19 }
  0x3a   : > { %641 = vrot.lane.b32.xlu0 %v3130_v4, %s3133_s17 }
  0x3c   : > { %533 = vrot.lane.b32.xlu1 %v3130_v4, %s3135_s20 }
  0x3e   : > { %588 = vrot.lane.b32.xlu0 %v3130_v4, %s3134_s19 }
  0x40   : > { %480 = vrot.lane.b32.xlu1 %v3130_v4, %s3136_s24 }
  0x42   : > { %535 = vrot.lane.b32.xlu0 %v3130_v4, %s3135_s20 }
  0x44   : > { %427 = vrot.lane.b32.xlu1 %v3130_v4, %s3137_s25 }
  0x46   : > { %482 = vrot.lane.b32.xlu0 %v3130_v4, %s3136_s24 }
  0x48   : > { %374 = vrot.lane.b32.xlu1 %v3130_v4, %s3138_s26 }
  0x4a   : > { %429 = vrot.lane.b32.xlu0 %v3130_v4, %s3137_s25 }
  0x4e   : > { %376 = vrot.lane.b32.xlu0 %v3130_v4, %s3138_s26 }
  0x9e   : > { %v232_v13 = vpop.permute.xlu1 %231 }
  0x9f   : > { %v235_v16 = vrot.slane %v232_v13, 4 }
  0xa0   : > { %v228_v12 = vpop.permute.xlu0 %227 }
  0xa1   : > { %v233_v14 = vrot.slane %v228_v12, 4 }
  0xa2   : > { %v693_v28 = vpop.permute.xlu1 %692 }
  0xa3   : > { %v237_v15 = vsel %vm4285_vm10, %v233_v14, %v228_v12  ;;  %v701_v43 = vrot.slane %v693_v28, 4 }
  0xa4   : > { %249 = vst.msk [vmem:[#allocation2] sm:$0x33] %vm248_vm11, %v237_v15  ;;  %v230_v17 = vpop.permute.xlu0 %229 }
  0xa5   : > { %v234_v18 = vrot.slane %v230_v17, 4 }
  0xa6   : > { %v640_v29 = vpop.permute.xlu1 %639 }
  0xa7   : > { %v239_v19 = vsel %vm4284_vm5, %v233_v14, %v234_v18  ;;  %v241_v20 = vsel %vm4284_vm5, %v234_v18, %v235_v16  ;;  %v648_v46 = vrot.slane %v640_v29, 4 }
  0xa8   : > { %v240_v21 = vsel %vm4285_vm10, %v239_v19, %v230_v17  ;;  %v242_v22 = vsel %vm4285_vm10, %v241_v20, %v232_v13  ;;  %v3329_v30 = vpop.permute.xlu0 %694 }
  0xa9   : > { %250 = vst [vmem:[#allocation2 + $0x8] sm:$0x33] %v240_v21  ;;  %254 = vst.msk [vmem:[#allocation2 + $0x10] sm:$0x33] %vm253_vm14, %v242_v22  ;;  %v702_v44 = vrot.slane %v3329_v30, 4 }
  0xaa   : > { %v587_v31 = vpop.permute.xlu1 %586 }
  0xab   : > { %v674_v23 = vld [vmem:[#allocation2] sm:$0xff]  ;;  %v710_v49 = vsel %vm4284_vm5, %v701_v43, %v702_v44  ;;  %v595_v52 = vrot.slane %v587_v31, 4 }
  0xac   : > { %686 = vrot.lane.b32.xlu1 %v674_v23, %s3132_s11  ;;  %v3331_v32 = vpop.permute.xlu0 %641  ;;  %v711_v55 = vsel %vm705_vm15, %v693_v28, %v710_v49 }
  0xad   : > { %v649_v47 = vrot.slane %v3331_v32, 4 }
  0xae   : > { %v3333_v33 = vpop.permute.xlu1 %533 }
  0xaf   : > { %v657_v56 = vsel %vm4284_vm5, %v648_v46, %v649_v47  ;;  %v542_v1 = vrot.slane %v3333_v33, 4 }
  0xb0   : > { %633 = vrot.lane.b32.xlu1 %v674_v23, %s3133_s17  ;;  %v675_v24 = vld [vmem:[#allocation2 + $0x8] sm:$0xff]  ;;  %v676_v25 = vld [vmem:[#allocation2 + $0x10] sm:$0xff]  ;;  %v3335_v34 = vpop.permute.xlu0 %588  ;;  %v658_v5 = vsel %vm4282_vm0, %v640_v29, %v657_v56 }
  0xb1   : > { %688 = vrot.lane.b32.xlu0 %v675_v24, %s3132_s11  ;;  %v596_v57 = vrot.slane %v3335_v34, 4 }
  0xb2   : > { %v3337_v35 = vpop.permute.xlu1 %480 }
  0xb3   : > { %v604_v6 = vsel %vm4284_vm5, %v595_v52, %v596_v57  ;;  %v489_v14 = vrot.slane %v3337_v35, 4 }
  0xb4   : > { %580 = vrot.lane.b32.xlu1 %v674_v23, %s3134_s19  ;;  %v3339_v36 = vpop.permute.xlu0 %535  ;;  %v605_v17 = vsel %vm599_vm1, %v587_v31, %v604_v6 }
  0xb5   : > { %635 = vrot.lane.b32.xlu0 %v675_v24, %s3133_s17  ;;  %v543_v7 = vrot.slane %v3339_v36, 4 }
  0xb6   : > { %v3341_v37 = vpop.permute.xlu1 %427 }
  0xb7   : > { %v551_v18 = vsel %vm4284_vm5, %v542_v1, %v543_v7 }
  0xb8   : > { %527 = vrot.lane.b32.xlu1 %v674_v23, %s3135_s20  ;;  %v3343_v38 = vpop.permute.xlu0 %482  ;;  %v552_v31 = vsel %vm4281_vm2, %v3333_v33, %v551_v18 }
  0xb9   : > { %582 = vrot.lane.b32.xlu0 %v675_v24, %s3134_s19  ;;  %v490_v19 = vrot.slane %v3343_v38, 4 }
  0xba   : > { %v3345_v39 = vpop.permute.xlu1 %374 }
  0xbc   : > { %474 = vrot.lane.b32.xlu1 %v674_v23, %s3136_s24  ;;  %v3347_v40 = vpop.permute.xlu0 %429 }
  0xbd   : > { %529 = vrot.lane.b32.xlu0 %v675_v24, %s3135_s20  ;;  %v437_v43 = vrot.slane %v3347_v40, 4 }
  0xc0   : > { %421 = vrot.lane.b32.xlu1 %v674_v23, %s3137_s25  ;;  %v3349_v42 = vpop.permute.xlu0 %376 }
  0xc1   : > { %476 = vrot.lane.b32.xlu0 %v675_v24, %s3136_s24 }
  0xc4   : > { %368 = vrot.lane.b32.xlu1 %v674_v23, %s3138_s26 }
  0xc5   : > { %423 = vrot.lane.b32.xlu0 %v675_v24, %s3137_s25 }
  0xc8   : > { %690 = vrot.lane.b32.xlu1 %v676_v25, %s3132_s11 }
  0xc9   : > { %370 = vrot.lane.b32.xlu0 %v675_v24, %s3138_s26 }
  0xcc   : > { %637 = vrot.lane.b32.xlu1 %v676_v25, %s3133_s17 }
  0xcd   : > { %696 = vrot.lane.b32.xlu0 %v3304_v26, %s3132_s11 }
  0xd0   : > { %584 = vrot.lane.b32.xlu1 %v676_v25, %s3134_s19 }
  0xd1   : > { %643 = vrot.lane.b32.xlu0 %v3304_v26, %s3133_s17 }
  0xd4   : > { %531 = vrot.lane.b32.xlu1 %v676_v25, %s3135_s20 }
  0xd5   : > { %590 = vrot.lane.b32.xlu0 %v3304_v26, %s3134_s19  ;;  %s176_s19 = sand.u32 1, %s3116_s13  }
  0xd8   : > { %478 = vrot.lane.b32.xlu1 %v676_v25, %s3136_s24 }
  0xd9   : > { %537 = vrot.lane.b32.xlu0 %v3304_v26, %s3135_s20 }
  0xdc   : > { %425 = vrot.lane.b32.xlu1 %v676_v25, %s3137_s25 }
  0xdd   : > { %484 = vrot.lane.b32.xlu0 %v3304_v26, %s3136_s24 }
  0xe0   : > { %372 = vrot.lane.b32.xlu1 %v676_v25, %s3138_s26 }
  0xe1   : > { %431 = vrot.lane.b32.xlu0 %v3304_v26, %s3137_s25 }
  0xe4   : > { %773 = vperm.xlu1 %3008, %v770_v27   ;;  %v436_v27 = vrot.slane %v3341_v37, 4 }
  0xe5   : > { %378 = vrot.lane.b32.xlu0 %v3304_v26, %s3138_s26 }
 0x11e   : > { %v687_v41 = vpop.permute.xlu1 %686 }
 0x11f   : > { %v698_v50 = vrot.slane %v687_v41, 4 }
 0x122   : > { %v634_v45 = vpop.permute.xlu1 %633 }
 0x123   : > { %v3353_v48 = vpop.permute.xlu0 %688  ;;  %v645_v60 = vrot.slane %v634_v45, 4 }
 0x124   : > { %v699_v51 = vrot.slane %v3353_v48, 4 }
 0x126   : > { %v704_v53 = vsel %vm4284_vm5, %v698_v50, %v699_v51  ;;  %v581_v54 = vpop.permute.xlu1 %580 }
 0x127   : > { %v706_v58 = vsel %vm705_vm15, %v687_v41, %v704_v53  ;;  %v3368_v59 = vpop.permute.xlu0 %635  ;;  %v592_v10 = vrot.slane %v581_v54, 4  ;;  %v498_v41 = vsel %vm4284_vm5, %v489_v14, %v490_v19 }
 0x128   : > { %v646_v61 = vrot.slane %v3368_v59, 4  ;;  %v2746_v62 = vcombine.high %v706_v58, %v711_v55  ;;  %v2745_v63 = vcombine.low %v706_v58, %v711_v55  ;;  %v499_v56 = vsel %vm493_vm3, %v3337_v35, %v498_v41 }
 0x129   : > { %v445_v58 = vsel %vm4284_vm5, %v436_v27, %v437_v43 }
 0x12a   : > { %v651_v2 = vsel %vm4284_vm5, %v645_v60, %v646_v61  ;;  %v528_v3 = vpop.permute.xlu1 %527  ;;  %964 = vmatprep.subr.bf16.mxu0 %v2746_v62  ;;  %v384_v60 = vrot.slane %v3349_v42, 4 }
 0x12b   : > { %v653_v8 = vsel %vm4282_vm0, %v634_v45, %v651_v2  ;;  %v3381_v9 = vpop.permute.xlu0 %582  ;;  %965 = vmatpush1.bf16.msra.mxu0 %v2745_v63  ;;  %v539_v22 = vrot.slane %v528_v3, 4 }
 0x12c   : > { %v593_v11 = vrot.slane %v3381_v9, 4  ;;  %v2741_v12 = vcombine.high %v653_v8, %v658_v5  ;;  %v2740_v13 = vcombine.low %v653_v8, %v658_v5  ;;  %v446_v8 = vsel %vm4280_vm4, %v3341_v37, %v445_v58 }
 0x12e   : > { %v598_v15 = vsel %vm4284_vm5, %v592_v10, %v593_v11  ;;  %v475_v16 = vpop.permute.xlu1 %474  ;;  %966 = vmatprep.subr.bf16.mxu0 %v2741_v12 }
 0x12f   : > { %v600_v20 = vsel %vm599_vm1, %v581_v54, %v598_v15  ;;  %v3394_v21 = vpop.permute.xlu0 %529  ;;  %967 = vmatpush1.bf16.msra.mxu0 %v2740_v13  ;;  %v486_v49 = vrot.slane %v475_v16, 4  ;;  %v383_v54 = vrot.slane %v3345_v39, 4 }
 0x130   : > { %v540_v23 = vrot.slane %v3394_v21, 4  ;;  %v2736_v24 = vcombine.high %v600_v20, %v605_v17  ;;  %v2735_v25 = vcombine.low %v600_v20, %v605_v17 }
 0x131   : > { %v392_v10 = vsel %vm4284_vm5, %v383_v54, %v384_v60 }
 0x132   : > { %v545_v28 = vsel %vm4284_vm5, %v539_v22, %v540_v23  ;;  %v422_v29 = vpop.permute.xlu1 %421  ;;  %968 = vmatprep.subr.bf16.mxu0 %v2736_v24  ;;  %v393_v24 = vsel %vm387_vm6, %v3345_v39, %v392_v10 }
 0x133   : > { %v547_v45 = vsel %vm4281_vm2, %v528_v3, %v545_v28  ;;  %v3408_v46 = vpop.permute.xlu0 %476  ;;  %969 = vmatpush1.bf16.msra.mxu0 %v2735_v25  ;;  %v433_v1 = vrot.slane %v422_v29, 4 }
 0x134   : > { %v487_v50 = vrot.slane %v3408_v46, 4  ;;  %v2731_v52 = vcombine.high %v547_v45, %v552_v31  ;;  %v2730_v53 = vcombine.low %v547_v45, %v552_v31 }
 0x136   : > { %v492_v33 = vsel %vm4284_vm5, %v486_v49, %v487_v50  ;;  %v369_v55 = vpop.permute.xlu1 %368  ;;  %970 = vmatprep.subr.bf16.mxu0 %v2731_v52 }
 0x137   : > { %v494_v62 = vsel %vm493_vm3, %v475_v16, %v492_v33  ;;  %v3422_v63 = vpop.permute.xlu0 %423  ;;  %971 = vmatpush1.bf16.msra.mxu0 %v2730_v53  ;;  %v380_v15 = vrot.slane %v369_v55, 4 }
 0x138   : > { %v434_v2 = vrot.slane %v3422_v63, 4  ;;  %v2726_v3 = vcombine.high %v494_v62, %v499_v56  ;;  %v2725_v5 = vcombine.low %v494_v62, %v499_v56  ;;  %v3456_v56 = vld [vmem:[#allocation4] sm:$0xf] }
 0x13a   : > { %v439_v35 = vsel %vm4284_vm5, %v433_v1, %v434_v2  ;;  %v691_v6 = vpop.permute.xlu1 %690  ;;  %972 = vmatprep.subr.bf16.mxu0 %v2726_v3  ;;  %v3139_v1 = vmov 0.0  }
 0x13b   : > { %v441_v12 = vsel %vm4280_vm4, %v422_v29, %v439_v35  ;;  %v700_v13 = vrot.slane %v691_v6, 4  ;;  %v3434_v14 = vpop.permute.xlu0 %370  ;;  %973 = vmatpush1.bf16.msra.mxu0 %v2725_v5 }
 0x13c   : > { %v381_v16 = vrot.slane %v3434_v14, 4  ;;  %v2721_v17 = vcombine.high %v441_v12, %v446_v8  ;;  %v2720_v18 = vcombine.low %v441_v12, %v446_v8 }
 0x13d   : > { %v709_v20 = vsel %vm705_vm15, %v691_v6, %v700_v13  ;;  %v707_v29 = vsel %vm4284_vm5, %v699_v51, %v700_v13 }
 0x13e   : > { %723 = vst [vmem:[#allocation3 + $0x100] sm:$0xf] %v709_v20  ;;  %v386_v37 = vsel %vm4284_vm5, %v380_v15, %v381_v16  ;;  %v638_v22 = vpop.permute.xlu1 %637  ;;  %974 = vmatprep.subr.bf16.mxu0 %v2721_v17  ;;  %v708_v54 = vsel %vm705_vm15, %v3353_v48, %v707_v29 }
 0x13f   : > { %v388_v25 = vsel %vm387_vm6, %v369_v55, %v386_v37  ;;  %v647_v27 = vrot.slane %v638_v22, 4  ;;  %v697_v28 = vpop.permute.xlu0 %696  ;;  %975 = vmatpush1.bf16.msra.mxu0 %v2720_v18 }
 0x140   : > { %v703_v31 = vrot.slane %v697_v28, 4  ;;  %v2716_v41 = vcombine.high %v388_v25, %v393_v24  ;;  %v2715_v45 = vcombine.low %v388_v25, %v393_v24 }
 0x141   : > { %v656_v49 = vsel %vm4282_vm0, %v638_v22, %v647_v27 }
 0x142   : > { %670 = vst [vmem:[#allocation3 + $0xd8] sm:$0xf] %v656_v49  ;;  %v712_v52 = vsel %vm4284_vm5, %v702_v44, %v703_v31  ;;  %v714_v39 = vsel %vm705_vm15, %v697_v28, %v703_v31  ;;  %v585_v53 = vpop.permute.xlu1 %584  ;;  %976 = vmatprep.subr.bf16.mxu0 %v2716_v41  ;;  %v654_v44 = vsel %vm4284_vm5, %v646_v61, %v647_v27 }
 0x143   : > { %v713_v51 = vsel %vm705_vm15, %v3329_v30, %v712_v52  ;;  %726 = vst [vmem:[#allocation3 + $0x114] sm:$0xf] %v714_v39  ;;  %v594_v33 = vrot.slane %v585_v53, 4  ;;  %v644_v55 = vpop.permute.xlu0 %643  ;;  %977 = vmatpush1.bf16.msra.mxu0 %v2715_v45  ;;  %v655_v61 = vsel %vm4282_vm0, %v3368_v59, %v654_v44 }
 0x144   : > { %v650_v58 = vrot.slane %v644_v55, 4  ;;  %v2748_v62 = vcombine.high %v708_v54, %v713_v51  ;;  %2870 = vmatprep.subr.bf16.mxu0 %v3139_v1  ;;  %v2747_v3 = vcombine.low %v708_v54, %v713_v51 }
 0x145   : > { %v603_v48 = vsel %vm599_vm1, %v585_v53, %v594_v33 }
 0x146   : > { %617 = vst [vmem:[#allocation3 + $0xb0] sm:$0xf] %v603_v48  ;;  %v659_v30 = vsel %vm4284_vm5, %v649_v47, %v650_v58  ;;  %v661_v5 = vsel %vm4282_vm0, %v644_v55, %v650_v58  ;;  %v532_v35 = vpop.permute.xlu1 %531  ;;  %2750 = vmatmul.mubr.msk.bf16.vlgmr.msra.gmra.mxu0 %vm4283_vm7, %v3456_v56  ;;  %1005 = vmatprep.subr.bf16.mxu1 %v2748_v62 }
 0x147   : > { %v660_v6 = vsel %vm4282_vm0, %v3331_v32, %v659_v30  ;;  %673 = vst [vmem:[#allocation3 + $0xec] sm:$0xf] %v661_v5  ;;  %v541_v8 = vrot.slane %v532_v35, 4  ;;  %v591_v10 = vpop.permute.xlu0 %590  ;;  %1006 = vmatpush1.bf16.msra.mxu1 %v2747_v3  ;;  %2884 = vmatprep.mubr.msk.bf16.mxu0 %vm4278_vm8, %v3139_v1  ;;  %v601_v47 = vsel %vm4284_vm5, %v593_v11, %v594_v33 }
 0x148   : > { %v597_v12 = vrot.slane %v591_v10, 4  ;;  %v2743_v13 = vcombine.high %v655_v61, %v660_v6  ;;  %v2742_v15 = vcombine.low %v655_v61, %v660_v6  ;;  %v602_v37 = vsel %vm599_vm1, %v3381_v9, %v601_v47 }
 0x149   : > { %v550_v59 = vsel %vm4281_vm2, %v532_v35, %v541_v8  ;;  %v548_v25 = vsel %vm4284_vm5, %v540_v23, %v541_v8 }
 0x14a   : > { %564 = vst [vmem:[#allocation3 + $0x88] sm:$0xf] %v550_v59  ;;  %v606_v32 = vsel %vm4284_vm5, %v596_v57, %v597_v12  ;;  %v608_v17 = vsel %vm599_vm1, %v591_v10, %v597_v12  ;;  %v479_v18 = vpop.permute.xlu1 %478  ;;  %v3011_v20 = vld [vmem:[#allocation3 + $0x100] ss:$20 sps:$4 sm:$0xff]   ;;  %1007 = vmatprep.subr.bf16.mxu1 %v2743_v13  ;;  %v549_v23 = vsel %vm4281_vm2, %v3394_v21, %v548_v25 }
 0x14b   : > { %v607_v11 = vsel %vm599_vm1, %v3335_v34, %v606_v32  ;;  %620 = vst [vmem:[#allocation3 + $0xc4] sm:$0xf] %v608_v17  ;;  %v488_v22 = vrot.slane %v479_v18, 4  ;;  %v538_v24 = vpop.permute.xlu0 %537  ;;  %1008 = vmatpush1.bf16.msra.mxu1 %v2742_v15  ;;  %2871 = vmatpush3.bf16.msra.mxu0 %v3011_v20 }
 0x14c   : > { %v544_v57 = vrot.slane %v538_v24, 4  ;;  %v2738_v27 = vcombine.high %v602_v37, %v607_v11  ;;  %v2737_v28 = vcombine.low %v602_v37, %v607_v11  ;;  %2872 = vmatprep.subr.bf16.mxu0 %v3139_v1 }
 0x14d   : > { %v497_v29 = vsel %vm493_vm3, %v479_v18, %v488_v22  ;;  %v495_v39 = vsel %vm4284_vm5, %v487_v50, %v488_v22 }
 0x14e   : > { %511 = vst [vmem:[#allocation3 + $0x60] sm:$0xf] %v497_v29  ;;  %v553_v34 = vsel %vm4284_vm5, %v543_v7, %v544_v57  ;;  %v555_v9 = vsel %vm4281_vm2, %v538_v24, %v544_v57  ;;  %v426_v31 = vpop.permute.xlu1 %425  ;;  %v3012_v41 = vld [vmem:[#allocation3 + $0xd8] ss:$20 sps:$4 sm:$0xff]   ;;  %1009 = vmatprep.subr.bf16.mxu1 %v2738_v27  ;;  %v496_v50 = vsel %vm493_vm3, %v3408_v46, %v495_v39 }
 0x14f   : > { %v554_v45 = vsel %vm4281_vm2, %v3339_v36, %v553_v34  ;;  %567 = vst [vmem:[#allocation3 + $0x9c] sm:$0xf] %v555_v9  ;;  %v435_v49 = vrot.slane %v426_v31, 4  ;;  %v485_v52 = vpop.permute.xlu0 %484  ;;  %1010 = vmatpush1.bf16.msra.mxu1 %v2737_v28  ;;  %2873 = vmatpush3.bf16.msra.mxu0 %v3012_v41 }
 0x150   : > { %v491_v7 = vrot.slane %v485_v52, 4  ;;  %v2733_v53 = vcombine.high %v549_v23, %v554_v45  ;;  %v2732_v54 = vcombine.low %v549_v23, %v554_v45  ;;  %2874 = vmatprep.subr.bf16.mxu0 %v3139_v1 }
 0x151   : > { %v444_v51 = vsel %vm4280_vm4, %v426_v31, %v435_v49  ;;  %v442_v3 = vsel %vm4284_vm5, %v434_v2, %v435_v49 }
 0x152   : > { %458 = vst [vmem:[#allocation3 + $0x38] sm:$0xf] %v444_v51  ;;  %v500_v36 = vsel %vm4284_vm5, %v490_v19, %v491_v7  ;;  %v502_v21 = vsel %vm493_vm3, %v485_v52, %v491_v7  ;;  %v373_v33 = vpop.permute.xlu1 %372  ;;  %v3013_v55 = vld [vmem:[#allocation3 + $0xb0] ss:$20 sps:$4 sm:$0xff]   ;;  %1011 = vmatprep.subr.bf16.mxu1 %v2733_v53  ;;  %v443_v2 = vsel %vm4280_vm4, %v3422_v63, %v442_v3 }
 0x153   : > { %v501_v44 = vsel %vm493_vm3, %v3343_v38, %v500_v36  ;;  %514 = vst [vmem:[#allocation3 + $0x74] sm:$0xf] %v502_v21  ;;  %v382_v58 = vrot.slane %v373_v33, 4  ;;  %v432_v62 = vpop.permute.xlu0 %431  ;;  %1012 = vmatpush1.bf16.msra.mxu1 %v2732_v54  ;;  %2875 = vmatpush3.bf16.msra.mxu0 %v3013_v55 }
 0x154   : > { %v438_v19 = vrot.slane %v432_v62, 4  ;;  %v2728_v48 = vcombine.high %v496_v50, %v501_v44  ;;  %v2727_v30 = vcombine.low %v496_v50, %v501_v44  ;;  %2876 = vmatprep.subr.bf16.mxu0 %v3139_v1 }
 0x155   : > { %v391_v5 = vsel %vm387_vm6, %v373_v33, %v382_v58  ;;  %v389_v8 = vsel %vm4284_vm5, %v381_v16, %v382_v58 }
 0x156   : > { %405 = vst [vmem:[#allocation3 + $0x10] sm:$0xf] %v391_v5  ;;  %v447_v38 = vsel %vm4284_vm5, %v437_v43, %v438_v19  ;;  %v449_v46 = vsel %vm4280_vm4, %v432_v62, %v438_v19  ;;  %v3014_v35 = vld [vmem:[#allocation3 + $0x88] ss:$20 sps:$4 sm:$0xff]   ;;  %1013 = vmatprep.subr.bf16.mxu1 %v2728_v48  ;;  %v390_v13 = vsel %vm387_vm6, %v3434_v14, %v389_v8 }
 0x157   : > { %v448_v61 = vsel %vm4280_vm4, %v3347_v40, %v447_v38  ;;  %461 = vst [vmem:[#allocation3 + $0x4c] sm:$0xf] %v449_v46  ;;  %v379_v6 = vpop.permute.xlu0 %378  ;;  %1014 = vmatpush1.bf16.msra.mxu1 %v2727_v30  ;;  %2877 = vmatpush3.bf16.msra.mxu0 %v3014_v35 }
 0x158   : > { %v385_v10 = vrot.slane %v379_v6, 4  ;;  %v2723_v43 = vcombine.high %v443_v2, %v448_v61  ;;  %v2722_v47 = vcombine.low %v443_v2, %v448_v61  ;;  %2878 = vmatprep.subr.bf16.mxu0 %v3139_v1 }
 0x15a   : > { %v394_v63 = vsel %vm4284_vm5, %v384_v60, %v385_v10  ;;  %v396_v12 = vsel %vm387_vm6, %v379_v6, %v385_v10  ;;  %v3015_v40 = vld [vmem:[#allocation3 + $0x60] ss:$20 sps:$4 sm:$0xff]   ;;  %1015 = vmatprep.subr.bf16.mxu1 %v2723_v43 }
 0x15b   : > { %v395_v16 = vsel %vm387_vm6, %v3349_v42, %v394_v63  ;;  %408 = vst [vmem:[#allocation3 + $0x24] sm:$0xf] %v396_v12  ;;  %1016 = vmatpush1.bf16.msra.mxu1 %v2722_v47  ;;  %2879 = vmatpush3.bf16.msra.mxu0 %v3015_v40  ;;  %v256_v42 = vand.u32 127, %v209_v0 }
 0x15c   : > { %v2718_v15 = vcombine.high %v390_v13, %v395_v16  ;;  %v2717_v59 = vcombine.low %v390_v13, %v395_v16  ;;  %2880 = vmatprep.subr.bf16.mxu0 %v3139_v1 }
 0x15d   : > { %v257_v14 = vadd.s32 128, %v256_v42  ;;  %v3547_v17 = vmul.u32.u64.low 3435973837, %v256_v42  ;;  %v3548_v18 = vmul.u32.u64.high 3435973837, %v256_v42, %v3547_v17  ;;  %v258_v29 = vadd.s32 256, %v256_v42 }
 0x15e   : > { %v3016_v32 = vld [vmem:[#allocation3 + $0x38] ss:$20 sps:$4 sm:$0xff]   ;;  %1017 = vmatprep.subr.bf16.mxu1 %v2718_v15  ;;  %v259_v34 = vadd.s32 384, %v256_v42  ;;  %v260_v45 = vadd.s32 512, %v256_v42 }
 0x15f   : > { %1018 = vmatpush1.bf16.msra.mxu1 %v2717_v59  ;;  %2881 = vmatpush3.bf16.msra.mxu0 %v3016_v32  ;;  %v3550_v20 = vmul.u32.u64.low 3435973837, %v257_v14  ;;  %v3551_v37 = vmul.u32.u64.high 3435973837, %v257_v14, %v3550_v20  ;;  %v267_v11 = vshrl.u32 %v3548_v18, 5  ;;  %v3555_v9 = vpop.permute.xlu1 %773 }
 0x160   : > { %2882 = vmatprep.subr.bf16.mxu0 %v3139_v1  ;;  %v3557_v41 = vmul.u32.u64.low 3435973837, %v258_v29  ;;  %v3558_v23 = vmul.u32.u64.high 3435973837, %v258_v29, %v3557_v41  ;;  %v3560_v52 = vmul.u32.u64.low 3435973837, %v259_v34  ;;  %v3561_v39 = vmul.u32.u64.high 3435973837, %v259_v34, %v3560_v52 }
 0x161   : > { %v278_v22 = vshrl.u32 %v3551_v37, 5  ;;  %v268_v24 = vmul.u32 40, %v267_v11  ;;  %v3569_v21 = vmul.u32.u64.low 3435973837, %v260_v45  ;;  %v3570_v33 = vmul.u32.u64.high 3435973837, %v260_v45, %v3569_v21 }
 0x162   : > { %v3017_v60 = vld [vmem:[#allocation3 + $0x10] ss:$20 sps:$4 sm:$0xff]   ;;  %2751 = vmatmul.mubr.msk.bf16.vlgmr.msra.gmra.mxu1 %vm4283_vm7, %v3456_v56  ;;  %v289_v19 = vshrl.u32 %v3558_v23, 5  ;;  %v300_v30 = vshrl.u32 %v3561_v39, 5 }
 0x163   : > { %1783 = vmatprep.mubr.bf16.mxu1 %v3130_v4  ;;  %2883 = vmatpush3.bf16.msra.mxu0 %v3017_v60  ;;  %v279_v25 = vmul.u32 40, %v278_v22  ;;  %v269_v57 = vsub.s32 %v256_v42, %v268_v24  ;;  %v311_v38 = vshrl.u32 %v3570_v33, 5 }
 0x164   : > { %v290_v5 = vmul.u32 40, %v289_v19  ;;  %v301_v46 = vmul.u32 40, %v300_v30 }
 0x165   : > { %v280_v27 = vsub.s32 %v257_v14, %v279_v25  ;;  %vm316_vm9 = vcmp.ne.s32.totalorder %v269_v57, 0  ;;  %vm321_vm11 = vcmp.lt.s32.totalorder %v269_v57, 0  ;;  %v312_v2 = vmul.u32 40, %v311_v38  ;;  %v3706_v38 = vld [vmem:[#allocation2 + $0x28] sm:$0xff] }
 0x166   : > { %2885 = vmatmul.mubr.msk.bf16.vlgmr.msra.gmra.mxu0 %vm4283_vm7, %v3456_v56  ;;  %v331_v56 = vadd.s32 40, %v269_v57  ;;  %vm326_vm14 = vmand %vm321_vm11, %vm316_vm9  ;;  %v291_v35 = vsub.s32 %v258_v29, %v290_v5  ;;  %v302_v61 = vsub.s32 %v259_v34, %v301_v46  ;;  %v3643_v29 = vld [vmem:[#allocation2 + $0x18] sm:$0xff] }
 0x167   : > { %1824 = vmatprep.mubr.bf16.mxu0 %v3130_v4  ;;  %vm317_vm12 = vcmp.ne.s32.totalorder %v280_v27, 0  ;;  %vm322_vm13 = vcmp.lt.s32.totalorder %v280_v27, 0  ;;  %v332_v0 = vadd.s32 40, %v280_v27  ;;  %v313_v6 = vsub.s32 %v260_v45, %v312_v2 }
 0x168   : > { %vm327_vm15 = vmand %vm322_vm13, %vm317_vm12  ;;  %v336_v28 = vsel %vm326_vm14, %v331_v56, %v269_v57  ;;  %vm318_vm13 = vcmp.ne.s32.totalorder %v291_v35, 0  ;;  %vm323_vm14 = vcmp.lt.s32.totalorder %v291_v35, 0  ;;  %v333_v8 = vadd.s32 40, %v291_v35 }
 0x169   : > { %v337_v31 = vsel %vm327_vm15, %v332_v0, %v280_v27  ;;  %vm341_vm1 = vcmp.ge.s32.totalorder %v336_v28, 12  ;;  %vm346_vm3 = vcmp.lt.s32.totalorder %v336_v28, 28  ;;  %vm319_vm15 = vcmp.ne.s32.totalorder %v302_v61, 0 }
 0x16a   : > { %vm342_vm6 = vcmp.ge.s32.totalorder %v337_v31, 12  ;;  %vm347_vm9 = vcmp.lt.s32.totalorder %v337_v31, 28  ;;  %vm3564_vm11 = vmand %vm341_vm1, %vm346_vm3  ;;  %vm324_vm1 = vcmp.lt.s32.totalorder %v302_v61, 0  ;;  %v334_v10 = vadd.s32 40, %v302_v61 }
 0x16b   : > { %vm3572_vm12 = vmand %vm342_vm6, %vm347_vm9  ;;  %vm320_vm6 = vcmp.ne.s32.totalorder %v313_v6, 0  ;;  %vm325_vm9 = vcmp.lt.s32.totalorder %v313_v6, 0  ;;  %v335_v47 = vadd.s32 40, %v313_v6 }
 0x16c   : > { %vm328_vm3 = vmand %vm323_vm14, %vm318_vm13 }
 0x16d   : > { %vm329_vm8 = vmand %vm324_vm1, %vm319_vm15  ;;  %v338_v43 = vsel %vm328_vm3, %v333_v8, %v291_v35  ;;  %vm4302_vm1 = vcmask 1043456  }
 0x16e   : > { %vm330_vm4 = vmand %vm325_vm9, %vm320_vm6  ;;  %v339_v63 = vsel %vm329_vm8, %v334_v10, %v302_v61  ;;  %vm343_vm2 = vcmp.ge.s32.totalorder %v338_v43, 12  ;;  %vm348_vm0 = vcmp.lt.s32.totalorder %v338_v43, 28  ;;  %vm1144_vm8 = vcmask 97284  }
 0x16f   : > { %v340_v13 = vsel %vm330_vm4, %v335_v47, %v313_v6  ;;  %vm344_vm7 = vcmp.ge.s32.totalorder %v339_v63, 12  ;;  %vm349_vm5 = vcmp.lt.s32.totalorder %v339_v63, 28  ;;  %vm3585_vm10 = vmand %vm343_vm2, %vm348_vm0  ;;  %vm1140_vm2 = vcmask 1047556   ;;  %v2756_v47 = vld [vmem:[%s4276_s2 + $0x8] sm:$0xff] }
 0x170   : > { %vm345_vm13 = vcmp.ge.s32.totalorder %v340_v13, 12  ;;  %vm350_vm14 = vcmp.lt.s32.totalorder %v340_v13, 28  ;;  %vm3590_vm15 = vmand %vm344_vm7, %vm349_vm5  ;;  %vm1139_vm5 = vcmask 1043552   ;;  %vm4301_vm7 = vcmask 97280  }
 0x171   : > { %vm3597_vm0 = vmand %vm345_vm13, %vm350_vm14 }
 0x172   : > { %vm3647_vm4 = vmor %vm1140_vm2, %vm1139_vm5  ;;  %vm1493_vm5 = vcmask 900096   ;;  %vm4309_vm2 = vcmask 916480  }
 0x173   : > { %vm4303_vm3 = vmmov %vm4301_vm7 }
 0x174   : > { %vm4304_vm6 = vmmov %vm4302_vm1 }
 0x175   : > { %vm3664_vm9 = vmor %vm1144_vm8, %vm4304_vm6  ;;  %vm4311_vm8 = vcmask 949248  }
 0x176   : > { %vm4307_vm13 = vmmov %vm4302_vm1 }
 0x177   : > { %vm4308_vm14 = vmmov %vm4303_vm3 }
 0x206   : > { %v996_v49 = vpop.f32.mrf.mxu0 }
 0x207   : > { %v997_v7 = vadd.f32 %v996_v49, %v3555_v9 }
 0x208   : > { %v998_v53 = vpop.f32.mrf.mxu0 }
 0x209   : > { %v999_v51 = vadd.f32 %v998_v53, %v3555_v9  ;;  %v1084_v36 = vmax.f32 %v997_v7, 0.0 }
 0x20a   : > { %v1000_v50 = vpop.f32.mrf.mxu0 }
 0x20b   : > { %v1085_v44 = vmax.f32 %v999_v51, 0.0  ;;  %v1099_v58 = vsel %vm3564_vm11, %v1084_v36, 0.0 }
 0x20c   : > { %v1001_v62 = vpop.f32.mrf.mxu0 }
 0x20d   : > { %v1100_v3 = vsel %vm3572_vm12, %v1085_v44, 0.0 }
 0x20e   : > { %v2840_v48 = vpack.c.bf16 %v1100_v3, %v1099_v58 }
 0x210   : > { %1122 = vrot.lane.b32.xlu0 %v2840_v48, %s3131_s10 }
 0x222   : > { %v1037_v12 = vpop.f32.mrf.mxu1 }
 0x223   : > { %v1038_v40 = vadd.f32 %v1037_v12, %v3555_v9 }
 0x224   : > { %v1039_v16 = vpop.f32.mrf.mxu1 }
 0x225   : > { %v1086_v59 = vmax.f32 %v1038_v40, 0.0  ;;  %v1040_v32 = vadd.f32 %v1039_v16, %v3555_v9 }
 0x226   : > { %v1041_v42 = vpop.f32.mrf.mxu1  ;;  %v1078_v14 = vpop.f32.mrf.mxu0 }
 0x227   : > { %v1087_v17 = vmax.f32 %v1040_v32, 0.0  ;;  %v1079_v18 = vadd.f32 %v1078_v14, %v3555_v9  ;;  %v1101_v37 = vsel %vm3585_vm10, %v1086_v59, 0.0 }
 0x228   : > { %v1042_v20 = vpop.f32.mrf.mxu1  ;;  %v2886_v24 = vpop.f32.mrf.mxu0 }
 0x229   : > { %v1102_v22 = vsel %vm3590_vm15, %v1087_v17, 0.0  ;;  %v1088_v25 = vmax.f32 %v1079_v18, 0.0 }
 0x22a   : > { %v2841_v57 = vpack.c.bf16 %v1102_v22, %v1101_v37  ;;  %v1081_v27 = vpop.f32.mrf.mxu0 }
 0x22b   : > { %v1103_v56 = vsel %vm3597_vm0, %v1088_v25, 0.0 }
 0x22c   : > { %1124 = vrot.lane.b32.xlu1 %v2841_v57, %s3131_s10  ;;  %v2842_v0 = vpack.c.bf16 %v1103_v56, %v1103_v56  ;;  %v2887_v28 = vpop.f32.mrf.mxu0 }
 0x22e   : > { %1126 = vrot.lane.b32.xlu0 %v2842_v0, %s3131_s10 }
 0x230   : > { %1482 = vrot.lane.b32.xlu1 %v3130_v4, %s3141_s29 }
 0x232   : > { %1480 = vrot.lane.b32.xlu0 %v3130_v4, %s3141_s29 }
 0x234   : > { %1429 = vrot.lane.b32.xlu1 %v3130_v4, %s3142_s30 }
 0x236   : > { %1484 = vrot.lane.b32.xlu0 %v3304_v26, %s3141_s29 }
 0x238   : > { %1377 = vrot.lane.b32.xlu1 %v3130_v4, %s3133_s17 }
 0x23a   : > { %1427 = vrot.lane.b32.xlu0 %v3130_v4, %s3142_s30 }
 0x23c   : > { %1325 = vrot.lane.b32.xlu1 %v3130_v4, %s3135_s20 }
 0x23e   : > { %1431 = vrot.lane.b32.xlu0 %v3304_v26, %s3142_s30 }
 0x240   : > { %1273 = vrot.lane.b32.xlu1 %v3130_v4, %s3137_s25 }
 0x242   : > { %1375 = vrot.lane.b32.xlu0 %v3130_v4, %s3133_s17 }
 0x244   : > { %1220 = vrot.lane.b32.xlu1 %v3130_v4, %s3143_s4 }
 0x246   : > { %1379 = vrot.lane.b32.xlu0 %v3304_v26, %s3133_s17 }
 0x24a   : > { %1323 = vrot.lane.b32.xlu0 %v3130_v4, %s3135_s20 }
 0x24e   : > { %1327 = vrot.lane.b32.xlu0 %v3304_v26, %s3135_s20 }
 0x252   : > { %1271 = vrot.lane.b32.xlu0 %v3130_v4, %s3137_s25 }
 0x256   : > { %1275 = vrot.lane.b32.xlu0 %v3304_v26, %s3137_s25 }
 0x25a   : > { %1218 = vrot.lane.b32.xlu0 %v3130_v4, %s3143_s4 }
 0x25e   : > { %1222 = vrot.lane.b32.xlu0 %v3304_v26, %s3143_s4 }
 0x262   : > { %1165 = vrot.lane.b32.xlu0 %v3643_v29, %s3144_s5 }
 0x282   : > { %v1123_v34 = vpop.permute.xlu0 %1122 }
 0x283   : > { %v1128_v9 = vrot.slane %v1123_v34, 4 }
 0x285   : > { %v1131_v41 = vsel %vm4301_vm7, %v1128_v9, %v1123_v34  ;;  %vm4310_vm7 = vcmask 932864  }
 0x286   : > { %1142 = vst.msk [vmem:[#allocation2] sm:$0xff] %vm3647_vm4, %v1131_v41 }
 0x28d   : > { %v1462_v4 = vld [vmem:[#allocation2] sm:$0xff] }
 0x28e   : > { %1474 = vrot.lane.b32.xlu1 %v1462_v4, %s3141_s29 }
 0x292   : > { %1421 = vrot.lane.b32.xlu1 %v1462_v4, %s3142_s30 }
 0x296   : > { %1369 = vrot.lane.b32.xlu1 %v1462_v4, %s3133_s17 }
 0x29a   : > { %1317 = vrot.lane.b32.xlu1 %v1462_v4, %s3135_s20 }
 0x29e   : > { %v1125_v26 = vpop.permute.xlu1 %1124  ;;  %1265 = vrot.lane.b32.xlu1 %v1462_v4, %s3137_s25 }
 0x29f   : > { %v1129_v23 = vrot.slane %v1125_v26, 4 }
 0x2a0   : > { %v1127_v45 = vpop.permute.xlu0 %1126 }
 0x2a1   : > { %v1132_v49 = vsel %vm4302_vm1, %v1128_v9, %v1129_v23  ;;  %v1130_v52 = vrot.slane %v1127_v45, 4  ;;  %vm4312_vm1 = vcmask 965632  }
 0x2a2   : > { %v1133_v39 = vsel %vm4303_vm3, %v1132_v49, %v1125_v26  ;;  %1212 = vrot.lane.b32.xlu1 %v1462_v4, %s3143_s4  ;;  %vm1231_vm3 = vcmask 982016   ;;  %v1483_v59 = vpop.permute.xlu1 %1482 }
 0x2a3   : > { %1476 = vrot.lane.b32.xlu0 %v1133_v39, %s3141_s29  ;;  %v1134_v53 = vsel %vm4307_vm13, %v1129_v23, %v1130_v52  ;;  %v1490_v56 = vrot.slane %v1483_v59, 4  ;;  %vm4313_vm13 = vmmov %vm4304_vm6 }
 0x2a4   : > { %v1135_v51 = vsel %vm4308_vm14, %v1134_v53, %v1127_v45  ;;  %v3670_v36 = vpop.permute.xlu0 %1480  ;;  %vm4314_vm14 = vmmov %vm4304_vm6 }
 0x2a5   : > { %1146 = vst.msk [vmem:[#allocation2 + $0x10] sm:$0xff] %vm3664_vm9, %v1135_v51  ;;  %v1489_v27 = vrot.slane %v3670_v36, 4 }
 0x2a6   : > { %1159 = vrot.lane.b32.xlu1 %v1462_v4, %s3144_s5  ;;  %v1430_v32 = vpop.permute.xlu1 %1429 }
 0x2a7   : > { %1423 = vrot.lane.b32.xlu0 %v1133_v39, %s3142_s30  ;;  %v1498_v34 = vsel %vm4304_vm6, %v1489_v27, %v1490_v56  ;;  %v1437_v26 = vrot.slane %v1430_v32, 4 }
 0x2a8   : > { %v3676_v21 = vpop.permute.xlu0 %1484  ;;  %v1499_v49 = vsel %vm1493_vm5, %v3670_v36, %v1498_v34 }
 0x2a9   : > { %v1491_v33 = vrot.slane %v3676_v21, 4 }
 0x2aa   : > { %v3749_v42 = vpop.permute.xlu1 %1377 }
 0x2ab   : > { %1371 = vrot.lane.b32.xlu0 %v1133_v39, %s3133_s17  ;;  %v1502_v50 = vsel %vm1493_vm5, %v3676_v21, %v1491_v33 }
 0x2ac   : > { %v1464_v44 = vld [vmem:[#allocation2 + $0x10] sm:$0xff]  ;;  %1514 = vst [vmem:[#allocation3 + $0x114] sm:$0xf] %v1502_v50  ;;  %v3684_v58 = vpop.permute.xlu0 %1427 }
 0x2ad   : > { %1478 = vrot.lane.b32.xlu1 %v1464_v44, %s3141_s29  ;;  %v1436_v0 = vrot.slane %v3684_v58, 4 }
 0x2ae   : > { %v3751_v14 = vpop.permute.xlu1 %1325 }
 0x2af   : > { %1319 = vrot.lane.b32.xlu0 %v1133_v39, %s3135_s20  ;;  %v1445_v52 = vsel %vm4314_vm14, %v1436_v0, %v1437_v26  ;;  %v1333_v36 = vrot.slane %v3751_v14, 4 }
 0x2b0   : > { %v3688_v62 = vpop.permute.xlu0 %1431 }
 0x2b1   : > { %1425 = vrot.lane.b32.xlu1 %v1464_v44, %s3142_s30  ;;  %v1438_v3 = vrot.slane %v3688_v62, 4 }
 0x2b2   : > { %v3753_v17 = vpop.permute.xlu1 %1273 }
 0x2b3   : > { %1267 = vrot.lane.b32.xlu0 %v1133_v39, %s3137_s25  ;;  %v1449_v19 = vsel %vm4309_vm2, %v3688_v62, %v1438_v3  ;;  %vm4315_vm2 = vmmov %vm4304_vm6 }
 0x2b4   : > { %1461 = vst [vmem:[#allocation3 + $0xec] sm:$0xf] %v1449_v19  ;;  %v3697_v48 = vpop.permute.xlu0 %1375 }
 0x2b5   : > { %1373 = vrot.lane.b32.xlu1 %v1464_v44, %s3133_s17  ;;  %v1384_v45 = vrot.slane %v3697_v48, 4 }
 0x2b6   : > { %v3755_v18 = vpop.permute.xlu1 %1220 }
 0x2b7   : > { %1214 = vrot.lane.b32.xlu0 %v1133_v39, %s3143_s4 }
 0x2b8   : > { %v3701_v30 = vpop.permute.xlu0 %1379 }
 0x2b9   : > { %1321 = vrot.lane.b32.xlu1 %v1464_v44, %s3135_s20  ;;  %v1386_v5 = vrot.slane %v3701_v30, 4 }
 0x2bb   : > { %1161 = vrot.lane.b32.xlu0 %v1133_v39, %s3144_s5  ;;  %v1396_v46 = vsel %vm4310_vm7, %v3701_v30, %v1386_v5  ;;  %vm4316_vm7 = vmmov %vm4315_vm2 }
 0x2bc   : > { %1408 = vst [vmem:[#allocation3 + $0xc4] sm:$0xf] %v1396_v46  ;;  %v3712_v35 = vpop.permute.xlu0 %1323  ;;  %v1385_v46 = vrot.slane %v3749_v42, 4 }
 0x2bd   : > { %1269 = vrot.lane.b32.xlu1 %v1464_v44, %s3137_s25  ;;  %s2936_s25 = smul.u32 640, %s3190_s16  ;;  %s2622_s16 = scalar_lea.sflag [#allocation6], %s176_s19 }
 0x2bf   : > { %1169 = vrot.lane.b32.xlu0 %v3706_v38, %s3144_s5  ;;  %s4229_s29 = scalar_lea.hbm %s4277_s3, %s2936_s25 }
 0x2c0   : > { %v3717_v2 = vpop.permute.xlu0 %1327 }
 0x2c1   : > { %1216 = vrot.lane.b32.xlu1 %v1464_v44, %s3143_s4  ;;  %v1334_v61 = vrot.slane %v3717_v2, 4 }
 0x2c3   : > { %v1344_v6 = vsel %vm4311_vm8, %v3717_v2, %v1334_v61  ;;  %vm4317_vm8 = vcmask 916480  }
 0x2c4   : > { %1356 = vst [vmem:[#allocation3 + $0x9c] sm:$0xf] %v1344_v6  ;;  %v3725_v8 = vpop.permute.xlu0 %1271  ;;  %v1500_v6 = vsel %vm4315_vm2, %v1490_v56, %v1491_v33 }
 0x2c5   : > { %1163 = vrot.lane.b32.xlu1 %v1464_v44, %s3144_s5 }
 0x2c8   : > { %v3728_v10 = vpop.permute.xlu0 %1275 }
 0x2c9   : > { %1167 = vrot.lane.b32.xlu1 %v3643_v29, %s3144_s5  ;;  %v1282_v43 = vrot.slane %v3728_v10, 4 }
 0x2cb   : > { %v1292_v63 = vsel %vm4312_vm1, %v3728_v10, %v1282_v43  ;;  %vm4318_vm1 = vmmov %vm4315_vm2 }
 0x2cc   : > { %1304 = vst [vmem:[#allocation3 + $0x74] sm:$0xf] %v1292_v63  ;;  %v3740_v12 = vpop.permute.xlu0 %1218  ;;  %v1447_v27 = vsel %vm4318_vm1, %v1437_v26, %v1438_v3  ;;  %vm4319_vm6 = vmmov %vm4318_vm1  ;;  %v1281_v3 = vrot.slane %v3753_v17, 4 }
 0x2cd   : > { %1563 = vperm.xlu1 %3008, %v2756_v47   ;;  %v1332_v47 = vrot.slane %v3712_v35, 4  ;;  %v1392_v21 = vsel %vm4319_vm6, %v1384_v45, %v1385_v46  ;;  %vm4321_vm14 = vmmov %vm4318_vm1  ;;  %vm4326_vm6 = vcmask 949248  }
 0x2ce   : > { %vm4322_vm2 = vmmov %vm4318_vm1 }
 0x2cf   : > { %v1340_v62 = vsel %vm4321_vm14, %v1332_v47, %v1333_v36  ;;  %vm4328_vm14 = vmmov %vm4322_vm2 }
 0x2d0   : > { %v3742_v40 = vpop.permute.xlu0 %1222 }
 0x2d1   : > { %v1229_v13 = vrot.slane %v3742_v40, 4 }
 0x2d3   : > { %v1240_v16 = vsel %vm1231_vm3, %v3742_v40, %v1229_v13 }
 0x2d4   : > { %1252 = vst [vmem:[#allocation3 + $0x4c] sm:$0xf] %v1240_v16  ;;  %v3759_v25 = vpop.permute.xlu0 %1165 }
 0x300   : > { %v1475_v20 = vpop.permute.xlu1 %1474 }
 0x301   : > { %v1486_v9 = vrot.slane %v1475_v20, 4 }
 0x304   : > { %v1422_v37 = vpop.permute.xlu1 %1421 }
 0x305   : > { %v1433_v51 = vrot.slane %v1422_v37, 4 }
 0x308   : > { %v1370_v22 = vpop.permute.xlu1 %1369 }
 0x309   : > { %v1381_v0 = vrot.slane %v1370_v22, 4 }
 0x30c   : > { %v3757_v24 = vpop.permute.xlu1 %1317 }
 0x310   : > { %v3761_v57 = vpop.permute.xlu1 %1265 }
 0x314   : > { %v3766_v41 = vpop.permute.xlu1 %1212 }
 0x315   : > { %v1477_v28 = vpop.permute.xlu0 %1476 }
 0x316   : > { %v1487_v4 = vrot.slane %v1477_v28, 4 }
 0x318   : > { %v1492_v23 = vsel %vm4313_vm13, %v1486_v9, %v1487_v4  ;;  %v3783_v63 = vpop.permute.xlu1 %1159  ;;  %vm4320_vm13 = vmmov %vm4317_vm8 }
 0x319   : > { %v1494_v39 = vsel %vm1493_vm5, %v1475_v20, %v1492_v23  ;;  %v3774_v53 = vpop.permute.xlu0 %1423  ;;  %v1446_v20 = vsel %vm4317_vm8, %v3684_v58, %v1445_v52  ;;  %v1280_v58 = vrot.slane %v3725_v8, 4 }
 0x31a   : > { %v1434_v50 = vrot.slane %v3774_v53, 4  ;;  %v2788_v44 = vcombine.high %v1494_v39, %v1499_v49  ;;  %v2787_v19 = vcombine.low %v1494_v39, %v1499_v49  ;;  %v1501_v49 = vsel %vm1493_vm5, %v1483_v59, %v1500_v6 }
 0x31c   : > { %v1439_v16 = vsel %vm4316_vm7, %v1433_v51, %v1434_v50  ;;  %1753 = vmatprep.subr.bf16.mxu1 %v2788_v44  ;;  %vm4323_vm7 = vmmov %vm4317_vm8  ;;  %vm4324_vm8 = vcmask 932864   ;;  %v1329_v44 = vrot.slane %v3757_v24, 4 }
 0x31d   : > { %v1441_v33 = vsel %vm4320_vm13, %v1422_v37, %v1439_v16  ;;  %v3793_v56 = vpop.permute.xlu0 %1371  ;;  %1754 = vmatpush1.bf16.msra.mxu1 %v2787_v19  ;;  %v1448_v45 = vsel %vm4323_vm7, %v1430_v32, %v1447_v27  ;;  %v1393_v52 = vsel %vm4324_vm8, %v3697_v48, %v1392_v21  ;;  %vm4325_vm1 = vmmov %vm4324_vm8  ;;  %v1341_v16 = vsel %vm4326_vm6, %v3712_v35, %v1340_v62 }
 0x31e   : > { %v1382_v34 = vrot.slane %v3793_v56, 4  ;;  %v2783_v9 = vcombine.high %v1441_v33, %v1446_v20  ;;  %v2782_v23 = vcombine.low %v1441_v33, %v1446_v20  ;;  %v1228_v32 = vrot.slane %v3755_v18, 4  ;;  %vm4327_vm13 = vmmov %vm4322_vm2 }
 0x31f   : > { %v1479_v26 = vpop.permute.xlu1 %1478  ;;  %v1227_v27 = vrot.slane %v3740_v12, 4  ;;  %vm4329_vm7 = vmmov %vm4326_vm6  ;;  %vm4331_vm8 = vcmask 965632  }
 0x320   : > { %v1387_v37 = vsel %vm4322_vm2, %v1381_v0, %v1382_v34  ;;  %1755 = vmatprep.subr.bf16.mxu1 %v2783_v9  ;;  %v1488_v59 = vrot.slane %v1479_v26, 4  ;;  %vm4333_vm6 = vmmov %vm4322_vm2 }
 0x321   : > { %v1388_v39 = vsel %vm4325_vm1, %v1370_v22, %v1387_v37  ;;  %v3809_v51 = vpop.permute.xlu0 %1319  ;;  %1756 = vmatpush1.bf16.msra.mxu1 %v2782_v23  ;;  %v1288_v22 = vsel %vm4328_vm14, %v1280_v58, %v1281_v3  ;;  %v1277_v58 = vrot.slane %v3761_v57, 4  ;;  %vm4332_vm1 = vcmask 916480  }
 0x322   : > { %v1330_v19 = vrot.slane %v3809_v51, 4  ;;  %v2778_v6 = vcombine.high %v1388_v39, %v1393_v52  ;;  %v2777_v47 = vcombine.low %v1388_v39, %v1393_v52  ;;  %v1497_v20 = vsel %vm1493_vm5, %v1479_v26, %v1488_v59  ;;  %vm4335_vm14 = vmmov %vm4332_vm1 }
 0x323   : > { %v1495_v48 = vsel %vm4327_vm13, %v1487_v4, %v1488_v59  ;;  %1511 = vst [vmem:[#allocation3 + $0x100] sm:$0xf] %v1497_v20  ;;  %v1426_v33 = vpop.permute.xlu1 %1425  ;;  %v1289_v59 = vsel %vm4331_vm8, %v3725_v8, %v1288_v22  ;;  %vm4334_vm13 = vmmov %vm4322_vm2 }
 0x324   : > { %v1496_v21 = vsel %vm1493_vm5, %v1477_v28, %v1495_v48  ;;  %v1335_v35 = vsel %vm4322_vm2, %v1329_v44, %v1330_v19  ;;  %1757 = vmatprep.subr.bf16.mxu1 %v2778_v6  ;;  %v1435_v0 = vrot.slane %v1426_v33, 4  ;;  %vm4330_vm5 = vmmov %vm4322_vm2  ;;  %v1236_v39 = vsel %vm4334_vm13, %v1227_v27, %v1228_v32 }
 0x325   : > { %v1336_v9 = vsel %vm4329_vm7, %v3757_v24, %v1335_v35  ;;  %v2790_v4 = vcombine.high %v1496_v21, %v1501_v49  ;;  %v2789_v23 = vcombine.low %v1496_v21, %v1501_v49  ;;  %v3828_v62 = vpop.permute.xlu0 %1267  ;;  %1758 = vmatpush1.bf16.msra.mxu1 %v2777_v47  ;;  %v1394_v52 = vsel %vm4330_vm5, %v1385_v46, %v1386_v5  ;;  %vm4336_vm7 = vmmov %vm4331_vm8 }
 0x326   : > { %v1278_v26 = vrot.slane %v3828_v62, 4  ;;  %v2773_v28 = vcombine.high %v1336_v9, %v1341_v16  ;;  %v2772_v37 = vcombine.low %v1336_v9, %v1341_v16  ;;  %v1444_v24 = vsel %vm4332_vm1, %v1426_v33, %v1435_v0  ;;  %vm4338_vm8 = vmmov %vm4322_vm2 }
 0x327   : > { %v1442_v49 = vsel %vm4333_vm6, %v1434_v50, %v1435_v0  ;;  %1794 = vmatprep.subr.bf16.mxu0 %v2790_v4  ;;  %1458 = vst [vmem:[#allocation3 + $0xd8] sm:$0xf] %v1444_v24  ;;  %v1374_v6 = vpop.permute.xlu1 %1373  ;;  %v1224_v16 = vrot.slane %v3766_v41, 4  ;;  %vm4337_vm5 = vcmask 932864   ;;  %vm4340_vm6 = vmmov %vm4322_vm2  ;;  %v1237_v21 = vsel %vm1231_vm3, %v3740_v12, %v1236_v39 }
 0x328   : > { %v1443_v44 = vsel %vm4335_vm14, %v3774_v53, %v1442_v49  ;;  %1795 = vmatpush1.bf16.msra.mxu0 %v2789_v23  ;;  %v1283_v30 = vsel %vm4322_vm2, %v1277_v58, %v1278_v26  ;;  %1759 = vmatprep.subr.bf16.mxu1 %v2773_v28  ;;  %v1383_v5 = vrot.slane %v1374_v6, 4  ;;  %v1395_v22 = vsel %vm4337_vm5, %v3749_v42, %v1394_v52  ;;  %vm4339_vm1 = vmmov %vm4337_vm5 }
 0x329   : > { %v1284_v8 = vsel %vm4336_vm7, %v3761_v57, %v1283_v30  ;;  %v2785_v50 = vcombine.high %v1443_v44, %v1448_v45  ;;  %v2784_v46 = vcombine.low %v1443_v44, %v1448_v45  ;;  %v3849_v47 = vpop.permute.xlu0 %1214  ;;  %1760 = vmatpush1.bf16.msra.mxu1 %v2772_v37  ;;  %v1342_v57 = vsel %vm4338_vm8, %v1333_v36, %v1334_v61  ;;  %vm4341_vm13 = vmmov %vm4339_vm1 }
 0x32a   : > { %v1225_v53 = vrot.slane %v3849_v47, 4  ;;  %v2768_v20 = vcombine.high %v1284_v8, %v1289_v59  ;;  %v2767_v48 = vcombine.low %v1284_v8, %v1289_v59  ;;  %v1391_v45 = vsel %vm4339_vm1, %v1374_v6, %v1383_v5  ;;  %vm4342_vm14 = vmmov %vm4322_vm2 }
 0x32b   : > { %v1389_v27 = vsel %vm4340_vm6, %v1382_v34, %v1383_v5  ;;  %1796 = vmatprep.subr.bf16.mxu0 %v2785_v50  ;;  %1405 = vst [vmem:[#allocation3 + $0xb0] sm:$0xf] %v1391_v45  ;;  %v1322_v33 = vpop.permute.xlu1 %1321  ;;  %vm4343_vm2 = vcmask 949248   ;;  %vm4344_vm7 = vmmov %vm4340_vm6 }
 0x32c   : > { %v1390_v42 = vsel %vm4341_vm13, %v3793_v56, %v1389_v27  ;;  %1797 = vmatpush1.bf16.msra.mxu0 %v2784_v46  ;;  %v1230_v2 = vsel %vm4342_vm14, %v1224_v16, %v1225_v53  ;;  %1761 = vmatprep.subr.bf16.mxu1 %v2768_v20  ;;  %v1331_v61 = vrot.slane %v1322_v33, 4  ;;  %vm4345_vm5 = vmmov %vm4343_vm2  ;;  %vm1178_vm14 = vcmask 998400  }
 0x32d   : > { %v1232_v36 = vsel %vm1231_vm3, %v3766_v41, %v1230_v2  ;;  %v2780_v35 = vcombine.high %v1390_v42, %v1395_v22  ;;  %v2779_v0 = vcombine.low %v1390_v42, %v1395_v22  ;;  %v1162_v34 = vpop.permute.xlu0 %1161  ;;  %1762 = vmatpush1.bf16.msra.mxu1 %v2767_v48  ;;  %v1343_v23 = vsel %vm4345_vm5, %v3751_v14, %v1342_v57  ;;  %vm4346_vm8 = vmmov %vm4343_vm2 }
 0x32e   : > { %v2763_v9 = vcombine.high %v1232_v36, %v1237_v21  ;;  %v2762_v4 = vcombine.low %v1232_v36, %v1237_v21  ;;  %v1339_v12 = vsel %vm4343_vm2, %v1322_v33, %v1331_v61  ;;  %v1337_v56 = vsel %vm4344_vm7, %v1330_v19, %v1331_v61  ;;  %vm4347_vm1 = vmmov %vm4340_vm6 }
 0x32f   : > { %1798 = vmatprep.subr.bf16.mxu0 %v2780_v35  ;;  %1353 = vst [vmem:[#allocation3 + $0x88] sm:$0xf] %v1339_v12  ;;  %v1338_v41 = vsel %vm4346_vm8, %v3809_v51, %v1337_v56  ;;  %v1270_v58 = vpop.permute.xlu1 %1269  ;;  %v1290_v28 = vsel %vm4347_vm1, %v1281_v3, %v1282_v43  ;;  %vm4348_vm6 = vcmask 965632   ;;  %vm4349_vm13 = vmmov %vm4347_vm1  ;;  %v1171_v46 = vrot.slane %v3783_v63, 4  ;;  %v1926_v35 = vld [vmem:[#allocation2 + $0x28] sm:$0xf] }
 0x330   : > { %1799 = vmatpush1.bf16.msra.mxu0 %v2779_v0  ;;  %1763 = vmatprep.subr.bf16.mxu1 %v2763_v9  ;;  %v1279_v37 = vrot.slane %v1270_v58, 4  ;;  %v2775_v52 = vcombine.high %v1338_v41, %v1343_v23  ;;  %v2774_v19 = vcombine.low %v1338_v41, %v1343_v23  ;;  %vm4350_vm2 = vmmov %vm4348_vm6  ;;  %v1516_v9 = vld [vmem:[#allocation4 + $0x4] sm:$0xf] }
 0x331   : > { %v1170_v59 = vpop.permute.xlu0 %1169  ;;  %1764 = vmatpush1.bf16.msra.mxu1 %v2762_v4  ;;  %v1291_v10 = vsel %vm4350_vm2, %v3753_v17, %v1290_v28  ;;  %vm4351_vm7 = vmmov %vm4350_vm2 }
 0x332   : > { %v1176_v24 = vrot.slane %v1170_v59, 4  ;;  %v1287_v14 = vsel %vm4348_vm6, %v1270_v58, %v1279_v37  ;;  %v1285_v51 = vsel %vm4349_vm13, %v1278_v26, %v1279_v37  ;;  %1800 = vmatprep.subr.bf16.mxu0 %v2775_v52  ;;  %vm4352_vm5 = vmmov %vm4347_vm1 }
 0x333   : > { %1301 = vst [vmem:[#allocation3 + $0x60] sm:$0xf] %v1287_v14  ;;  %v1286_v43 = vsel %vm4351_vm7, %v3828_v62, %v1285_v51  ;;  %v1217_v3 = vpop.permute.xlu1 %1216  ;;  %v1238_v39 = vsel %vm4352_vm5, %v1228_v32, %v1229_v13  ;;  %vm4353_vm8 = vmmov %vm4347_vm1  ;;  %v1172_v13 = vrot.slane %v1162_v34, 4  ;;  %vm4357_vm7 = vcmask 916480  }
 0x334   : > { %1801 = vmatpush1.bf16.msra.mxu0 %v2774_v19  ;;  %v1187_v49 = vsel %vm1178_vm14, %v1170_v59, %v1176_v24  ;;  %v1226_v26 = vrot.slane %v1217_v3, 4  ;;  %v2770_v44 = vcombine.high %v1286_v43, %v1291_v10  ;;  %v2769_v6 = vcombine.low %v1286_v43, %v1291_v10  ;;  %vm4354_vm6 = vmmov %vm4347_vm1 }
 0x335   : > { %1199 = vst [vmem:[#allocation3 + $0x24] sm:$0xf] %v1187_v49  ;;  %v1239_v62 = vsel %vm1231_vm3, %v3755_v18, %v1238_v39  ;;  %v1174_v18 = vrot.slane %v3759_v25, 4  ;;  %v1177_v20 = vsel %vm4347_vm1, %v1171_v46, %v1172_v13  ;;  %vm4355_vm13 = vmmov %vm4347_vm1 }
 0x336   : > { %v1235_v17 = vsel %vm1231_vm3, %v1217_v3, %v1226_v26  ;;  %v1233_v30 = vsel %vm4353_vm8, %v1225_v53, %v1226_v26  ;;  %1802 = vmatprep.subr.bf16.mxu0 %v2770_v44  ;;  %vm4356_vm2 = vmmov %vm4347_vm1  ;;  %v1179_v45 = vsel %vm1178_vm14, %v3783_v63, %v1177_v20  ;;  %v3018_v63 = vld [vmem:[#allocation3 + $0x100] ss:$20 sps:$4 sm:$0xff]   ;;  %v3021_v4 = vld [vmem:[#allocation3 + $0x88] ss:$20 sps:$4 sm:$0xff]   ;;  %vm4361_vm1 = vcmask 97280  }
 0x337   : > { %1249 = vst [vmem:[#allocation3 + $0x38] sm:$0xf] %v1235_v17  ;;  %v1234_v40 = vsel %vm1231_vm3, %v3849_v47, %v1233_v30  ;;  %v1164_v5 = vpop.permute.xlu1 %1163  ;;  %vm4358_vm5 = vmmov %vm4357_vm7 }
 0x338   : > { %1803 = vmatpush1.bf16.msra.mxu0 %v2769_v6  ;;  %v1173_v8 = vrot.slane %v1164_v5, 4  ;;  %v2765_v32 = vcombine.high %v1234_v40, %v1239_v62  ;;  %v2764_v50 = vcombine.low %v1234_v40, %v1239_v62  ;;  %vm4360_vm8 = vmmov %vm4358_vm5 }
 0x33a   : > { %v1182_v16 = vsel %vm1178_vm14, %v1164_v5, %v1173_v8  ;;  %1804 = vmatprep.subr.bf16.mxu0 %v2765_v32  ;;  %v1180_v47 = vsel %vm4354_vm6, %v1172_v13, %v1173_v8  ;;  %v3022_v12 = vld [vmem:[#allocation3 + $0x60] ss:$20 sps:$4 sm:$0xff]   ;;  %vm4362_vm6 = vmmov %vm4356_vm2 }
 0x33b   : > { %1196 = vst [vmem:[#allocation3 + $0x10] sm:$0xf] %v1182_v16  ;;  %v1168_v53 = vpop.permute.xlu1 %1167  ;;  %v1181_v27 = vsel %vm1178_vm14, %v1162_v34, %v1180_v47  ;;  %v3020_v34 = vld [vmem:[#allocation3 + $0xb0] ss:$20 sps:$4 sm:$0xff]  }
 0x33c   : > { %1805 = vmatpush1.bf16.msra.mxu0 %v2764_v50  ;;  %v1175_v48 = vrot.slane %v1168_v53, 4 }
 0x33e   : > { %v1183_v22 = vsel %vm4355_vm13, %v1174_v18, %v1175_v48  ;;  %v1185_v57 = vsel %vm4356_vm2, %v1175_v48, %v1176_v24  ;;  %v3023_v56 = vld [vmem:[#allocation3 + $0x38] ss:$20 sps:$4 sm:$0xff]   ;;  %vm4363_vm13 = vmmov %vm4361_vm1 }
 0x33f   : > { %v1184_v21 = vsel %vm1178_vm14, %v3759_v25, %v1183_v22  ;;  %v1186_v42 = vsel %vm1178_vm14, %v1168_v53, %v1185_v57  ;;  %vm4359_vm14 = vmmov 0   ;;  %v3019_v25 = vld [vmem:[#allocation3 + $0xd8] ss:$20 sps:$4 sm:$0xff]  }
 0x340   : > { %v2758_v33 = vcombine.high %v1179_v45, %v1184_v21  ;;  %v2760_v2 = vcombine.high %v1181_v27, %v1186_v42  ;;  %v2757_v61 = vcombine.low %v1179_v45, %v1184_v21  ;;  %v2759_v36 = vcombine.low %v1181_v27, %v1186_v42 }
 0x342   : > { %1765 = vmatprep.subr.bf16.mxu1 %v2758_v33  ;;  %1806 = vmatprep.subr.bf16.mxu0 %v2760_v2  ;;  %v3024_v0 = vld [vmem:[#allocation3 + $0x10] ss:$20 sps:$4 sm:$0xff]  }
 0x343   : > { %1766 = vmatpush1.bf16.msra.mxu1 %v2757_v61  ;;  %1807 = vmatpush1.bf16.msra.mxu0 %v2759_v36  ;;  %1932 = vst [vmem:[#allocation3 + $0x24] sm:$0xf] %v1926_v35 }
 0x344   : > { %2888 = vmatprep.subr.bf16.mxu1 %v3139_v1 }
 0x346   : > { %2792 = vmatmul.mubr.msk.bf16.vlgmr.msra.gmra.mxu1 %vm4357_vm7, %v1516_v9  ;;  %2793 = vmatmul.mubr.msk.bf16.vlgmr.msra.gmra.mxu0 %vm4358_vm5, %v1516_v9  ;;  %vm2226_vm7 = vcmask 850944  }
 0x347   : > { %2889 = vmatpush3.bf16.msra.mxu1 %v3018_v63  ;;  %2902 = vmatprep.mubr.msk.bf16.mxu1 %vm4359_vm14, %v3139_v1 }
 0x348   : > { %2890 = vmatprep.subr.bf16.mxu1 %v3139_v1  ;;  %2516 = vmatprep.mubr.bf16.mxu0 %v3643_v29  ;;  %v1564_v23 = vpop.permute.xlu1 %1563 }
 0x34b   : > { %2891 = vmatpush3.bf16.msra.mxu1 %v3019_v25 }
 0x34c   : > { %2892 = vmatprep.subr.bf16.mxu1 %v3139_v1 }
 0x34f   : > { %2893 = vmatpush3.bf16.msra.mxu1 %v3020_v34 }
 0x350   : > { %2894 = vmatprep.subr.bf16.mxu1 %v3139_v1 }
 0x353   : > { %2895 = vmatpush3.bf16.msra.mxu1 %v3021_v4 }
 0x354   : > { %2896 = vmatprep.subr.bf16.mxu1 %v3139_v1 }
 0x357   : > { %2897 = vmatpush3.bf16.msra.mxu1 %v3022_v12 }
 0x358   : > { %2898 = vmatprep.subr.bf16.mxu1 %v3139_v1 }
 0x35b   : > { %2899 = vmatpush3.bf16.msra.mxu1 %v3023_v56 }
 0x35c   : > { %2900 = vmatprep.subr.bf16.mxu1 %v3139_v1 }
 0x35f   : > { %2901 = vmatpush3.bf16.msra.mxu1 %v3024_v0 }
 0x362   : > { %2903 = vmatmul.mubr.msk.bf16.vlgmr.msra.gmra.mxu1 %vm4360_vm8, %v1516_v9  ;;  %vm2173_vm8 = vcmask 883712  }
 0x363   : > { %2557 = vmatprep.mubr.bf16.mxu1 %v3643_v29 }
 0x406   : > { %v1785_v41 = vpop.f32.mrf.mxu1  ;;  %v1826_v58 = vpop.f32.mrf.mxu0 }
 0x407   : > { %v1786_v28 = vadd.f32 %v1785_v41, %v1564_v23  ;;  %v1827_v37 = vadd.f32 %v1826_v58, %v1564_v23 }
 0x408   : > { %v1787_v52 = vpop.f32.mrf.mxu1  ;;  %v1828_v19 = vpop.f32.mrf.mxu0 }
 0x409   : > { %v1873_v59 = vmax.f32 %v1786_v28, 0.0  ;;  %v1875_v24 = vmax.f32 %v1827_v37, 0.0  ;;  %v1788_v14 = vadd.f32 %v1787_v52, %v1564_v23  ;;  %v1829_v51 = vadd.f32 %v1828_v19, %v1564_v23 }
 0x40a   : > { %v1789_v10 = vpop.f32.mrf.mxu1  ;;  %v1830_v43 = vpop.f32.mrf.mxu0 }
 0x40b   : > { %v1874_v3 = vmax.f32 %v1788_v14, 0.0  ;;  %v1876_v49 = vmax.f32 %v1829_v51, 0.0  ;;  %v1878_v44 = vsel %vm3564_vm11, %v1873_v59, 0.0  ;;  %v1880_v6 = vsel %vm3585_vm10, %v1875_v24, 0.0 }
 0x40c   : > { %v1790_v39 = vpop.f32.mrf.mxu1  ;;  %v1831_v26 = vpop.f32.mrf.mxu0 }
 0x40d   : > { %v1879_v17 = vsel %vm3572_vm12, %v1874_v3, 0.0  ;;  %v1881_v30 = vsel %vm3590_vm15, %v1876_v49, 0.0 }
 0x40e   : > { %v2843_v62 = vpack.c.bf16 %v1879_v17, %v1878_v44  ;;  %v2844_v40 = vpack.c.bf16 %v1881_v30, %v1880_v6  ;;  %v2798_v6 = vld [vmem:[%s4276_s2 + $0x10] sm:$0xff] }
 0x410   : > { %1901 = vrot.lane.b32.xlu0 %v2843_v62, %s3131_s10  ;;  %1903 = vrot.lane.b32.xlu1 %v2844_v40, %s3131_s10 }
 0x414   : > { %2213 = vrot.lane.b32.xlu1 %v3643_v29, %s3145_s8 }
 0x418   : > { %2160 = vrot.lane.b32.xlu1 %v3643_v29, %s3146_s9 }
 0x41c   : > { %2108 = vrot.lane.b32.xlu1 %v3643_v29, %s3142_s30 }
 0x420   : > { %2056 = vrot.lane.b32.xlu1 %v3643_v29, %s3135_s20 }
 0x422   : > { %v1867_v5 = vpop.f32.mrf.mxu1 }
 0x423   : > { %v1868_v8 = vadd.f32 %v1867_v5, %v1564_v23 }
 0x424   : > { %v2904_v13 = vpop.f32.mrf.mxu1  ;;  %2004 = vrot.lane.b32.xlu1 %v3643_v29, %s3143_s4 }
 0x425   : > { %v1877_v32 = vmax.f32 %v1868_v8, 0.0 }
 0x426   : > { %v1870_v50 = vpop.f32.mrf.mxu1 }
 0x427   : > { %v1882_v46 = vsel %vm3597_vm0, %v1877_v32, 0.0 }
 0x428   : > { %v2845_v16 = vpack.c.bf16 %v1882_v46, %v1882_v46  ;;  %v2905_v53 = vpop.f32.mrf.mxu1 }
 0x42a   : > { %1905 = vrot.lane.b32.xlu0 %v2845_v16, %s3131_s10  ;;  %s3147_s10 = smov 124  }
 0x42e   : > { %2215 = vrot.lane.b32.xlu0 %v3643_v29, %s3145_s8 }
 0x432   : > { %2162 = vrot.lane.b32.xlu0 %v3643_v29, %s3146_s9 }
 0x436   : > { %2110 = vrot.lane.b32.xlu0 %v3643_v29, %s3142_s30 }
 0x43a   : > { %2058 = vrot.lane.b32.xlu0 %v3643_v29, %s3135_s20 }
 0x43e   : > { %2006 = vrot.lane.b32.xlu0 %v3643_v29, %s3143_s4 }
 0x482   : > { %v1904_v18 = vpop.permute.xlu1 %1903  ;;  %v1902_v20 = vpop.permute.xlu0 %1901 }
 0x483   : > { %v1908_v47 = vrot.slane %v1904_v18, 4  ;;  %v1907_v48 = vrot.slane %v1902_v20, 4 }
 0x485   : > { %v1910_v22 = vsel %vm4361_vm1, %v1907_v48, %v1902_v20  ;;  %v1911_v57 = vsel %vm4362_vm6, %v1907_v48, %v1908_v47  ;;  %vm4369_vm6 = vcmask 916480  }
 0x486   : > { %v3967_v45 = vsel %vm4363_vm13, %v1911_v57, %v1904_v18  ;;  %1918 = vst.msk [vmem:[#allocation2] sm:$0xff] %vm3647_vm4, %v1910_v22  ;;  %v2214_v31 = vpop.permute.xlu1 %2213  ;;  %vm4364_vm4 = vmmov %vm4356_vm2 }
 0x487   : > { %1919 = vst [vmem:[#allocation2 + $0x8] sm:$0xff] %v3967_v45  ;;  %2209 = vrot.lane.b32.xlu0 %v3967_v45, %s3145_s8  ;;  %v2222_v61 = vrot.slane %v2214_v31, 4  ;;  %vm4365_vm2 = vmmov %vm4361_vm1 }
 0x488   : > { %vm4366_vm5 = vmmov %vm4364_vm4 }
 0x489   : > { %vm4368_vm1 = vmmov %vm4364_vm4 }
 0x48a   : > { %v2161_v21 = vpop.permute.xlu1 %2160  ;;  %vm4370_vm13 = vmmov %vm4368_vm1 }
 0x48b   : > { %2156 = vrot.lane.b32.xlu0 %v3967_v45, %s3146_s9  ;;  %v2169_v25 = vrot.slane %v2161_v21, 4 }
 0x48d   : > { %v3976_v27 = vld [vmem:[#allocation2] sm:$0xff] }
 0x48e   : > { %2207 = vrot.lane.b32.xlu1 %v3976_v27, %s3145_s8  ;;  %v2109_v0 = vpop.permute.xlu1 %2108 }
 0x48f   : > { %2104 = vrot.lane.b32.xlu0 %v3967_v45, %s3142_s30  ;;  %v2117_v23 = vrot.slane %v2109_v0, 4 }
 0x492   : > { %2154 = vrot.lane.b32.xlu1 %v3976_v27, %s3146_s9  ;;  %v2057_v12 = vpop.permute.xlu1 %2056 }
 0x493   : > { %2052 = vrot.lane.b32.xlu0 %v3967_v45, %s3135_s20  ;;  %v2065_v19 = vrot.slane %v2057_v12, 4 }
 0x496   : > { %2102 = vrot.lane.b32.xlu1 %v3976_v27, %s3142_s30  ;;  %v2005_v14 = vpop.permute.xlu1 %2004 }
 0x497   : > { %2000 = vrot.lane.b32.xlu0 %v3967_v45, %s3143_s4  ;;  %v2013_v43 = vrot.slane %v2005_v14, 4 }
 0x49a   : > { %2050 = vrot.lane.b32.xlu1 %v3976_v27, %s3135_s20 }
 0x49b   : > { %1947 = vrot.lane.b32.xlu0 %v3967_v45, %s3147_s10 }
 0x49c   : > { %v1906_v42 = vpop.permute.xlu0 %1905 }
 0x49d   : > { %v1909_v33 = vrot.slane %v1906_v42, 4 }
 0x49e   : > { %1998 = vrot.lane.b32.xlu1 %v3976_v27, %s3143_s4 }
 0x49f   : > { %v1913_v2 = vsel %vm4364_vm4, %v1908_v47, %v1909_v33  ;;  %1953 = vrot.lane.b32.xlu0 %v3643_v29, %s3147_s10 }
 0x4a0   : > { %v1914_v36 = vsel %vm4365_vm2, %v1913_v2, %v1906_v42  ;;  %v4000_v35 = vpop.permute.xlu0 %2215  ;;  %vm4372_vm2 = vmmov %vm4368_vm1 }
 0x4a1   : > { %1920 = vst.msk [vmem:[#allocation2 + $0x10] sm:$0xff] %vm3664_vm9, %v1914_v36  ;;  %v2223_v9 = vrot.slane %v4000_v35, 4  ;;  %vm4367_vm9 = vmmov %vm4364_vm4  ;;  %vm4371_vm4 = vcmask 949248  }
 0x4a2   : > { %1945 = vrot.lane.b32.xlu1 %v3976_v27, %s3147_s10 }
 0x4a3   : > { %2217 = vrot.lane.b32.xlu0 %v3706_v38, %s3145_s8  ;;  %v2231_v63 = vsel %vm4366_vm5, %v2222_v61, %v2223_v9  ;;  %vm4373_vm5 = vmmov %vm4368_vm1 }
 0x4a4   : > { %v2232_v34 = vsel %vm2226_vm7, %v2214_v31, %v2231_v63  ;;  %v4013_v4 = vpop.permute.xlu0 %2162 }
 0x4a5   : > { %v2170_v7 = vrot.slane %v4013_v4, 4 }
 0x4a6   : > { %1951 = vrot.lane.b32.xlu1 %v3643_v29, %s3147_s10 }
 0x4a7   : > { %2164 = vrot.lane.b32.xlu0 %v3706_v38, %s3146_s9  ;;  %v2178_v56 = vsel %vm4367_vm9, %v2169_v25, %v2170_v7  ;;  %vm4374_vm9 = vmmov %vm4368_vm1 }
 0x4a8   : > { %v2197_v41 = vld [vmem:[#allocation2 + $0x10] sm:$0xff]  ;;  %v2179_v58 = vsel %vm2173_vm8, %v2161_v21, %v2178_v56  ;;  %v4024_v28 = vpop.permute.xlu0 %2110 }
 0x4a9   : > { %v1923_v37 = vld [vmem:[#allocation2 + $0x10] sm:$0xf]  ;;  %v2118_v52 = vrot.slane %v4024_v28, 4 }
 0x4aa   : > { %1929 = vst [vmem:[#allocation3 + $0x10] sm:$0xf] %v1923_v37  ;;  %2211 = vrot.lane.b32.xlu1 %v2197_v41, %s3145_s8 }
 0x4ab   : > { %2112 = vrot.lane.b32.xlu0 %v3706_v38, %s3142_s30  ;;  %v2125_v29 = vsel %vm4368_vm1, %v2117_v23, %v2118_v52 }
 0x4ac   : > { %v2126_v59 = vsel %vm4369_vm6, %v2109_v0, %v2125_v29  ;;  %v4034_v24 = vpop.permute.xlu0 %2058 }
 0x4ad   : > { %v2066_v51 = vrot.slane %v4034_v24, 4 }
 0x4ae   : > { %2158 = vrot.lane.b32.xlu1 %v2197_v41, %s3146_s9 }
 0x4af   : > { %2060 = vrot.lane.b32.xlu0 %v3706_v38, %s3135_s20  ;;  %v2073_v10 = vsel %vm4370_vm13, %v2065_v19, %v2066_v51  ;;  %vm4375_vm13 = vmmov %vm4368_vm1 }
 0x4b0   : > { %v2074_v3 = vsel %vm4371_vm4, %v2057_v12, %v2073_v10  ;;  %v4044_v49 = vpop.permute.xlu0 %2006 }
 0x4b1   : > { %v2014_v39 = vrot.slane %v4044_v49, 4 }
 0x4b2   : > { %2106 = vrot.lane.b32.xlu1 %v2197_v41, %s3142_s30 }
 0x4b3   : > { %2008 = vrot.lane.b32.xlu0 %v3706_v38, %s3143_s4  ;;  %v2021_v26 = vsel %vm4372_vm2, %v2013_v43, %v2014_v39  ;;  %vm4376_vm2 = vmmov %vm4368_vm1 }
 0x4b4   : > { %v4054_v44 = vsel %vm1231_vm3, %v2005_v14, %v2021_v26 }
 0x4b6   : > { %2054 = vrot.lane.b32.xlu1 %v2197_v41, %s3135_s20  ;;  %s2924_s20 = smul.u32 40, %s176_s19 }
 0x4b7   : > { %1955 = vrot.lane.b32.xlu0 %v3706_v38, %s3147_s10 }
 0x4b8   : > { %s178_s24 = scalar_lea.vmem [#allocation7], %s2924_s20 }
 0x4b9   : > { %s2636_s26 = sshll.u32 %s178_s24, 4  ;;  %s4231_s26 = int_to_ptr.vmem [resolvable:$true] %s2636_s26 }
 0x4ba   : > { %2002 = vrot.lane.b32.xlu1 %v2197_v41, %s3143_s4  ;;  %s3060_s30 = scalar_lea.vmem %s4231_s26, 640  ;;  %s3148_s4 = smov [#allocation7]  }
 0x4bb   : > { %p3061_p6 = scmp.ne.s32.totalorder %s4231_s26, %s3060_s30  ;;  %s3064_s5 = sshll.u32 %s3148_s4, 4  ;;  %s3065_s5 = int_to_ptr.vmem [resolvable:$false] %s3064_s5 }
 0x4bc   : > { %s3066_s6 = scalar_lea.vmem %s3065_s5, 1280  ;;  %p3067_p11 = scmp.lt.s32.totalorder %s4231_s26, %s3065_s5 }
 0x4bd   : > { %p3062_p9 = pnand %p3061_p6, %p3207_p5  ;;  %p3068_p12 = scmp.lt.s32.totalorder %s3066_s6, %s3060_s30 }
 0x4be   : > { %1949 = vrot.lane.b32.xlu1 %v2197_v41, %s3147_s10 }
 0x4bf   : > { %p3063_p10 = pneg %p3062_p9  ;;  %p3069_p13 = por %p3068_p12, %p3067_p11 }
 0x4c1   : > { %p3070_p0 = pnand %p3069_p13, %p3063_p10 }
 0x4c2   : > { %2296 = vperm.xlu1 %3008, %v2798_v6  }
 0x4f9   : > { %v4064_v17 = vpop.permute.xlu0 %2209 }
 0x4fa   : > { %v2220_v5 = vrot.slane %v4064_v17, 4 }
 0x4fd   : > { %v4066_v30 = vpop.permute.xlu0 %2156 }
 0x4fe   : > { %v2167_v46 = vrot.slane %v4066_v30, 4 }
 0x500   : > { %v2208_v62 = vpop.permute.xlu1 %2207 }
 0x501   : > { %v2219_v40 = vrot.slane %v2208_v62, 4  ;;  %v4069_v8 = vpop.permute.xlu0 %2104 }
 0x502   : > { %v2115_v57 = vrot.slane %v4069_v8, 4 }
 0x503   : > { %v2225_v38 = vsel %vm4373_vm5, %v2219_v40, %v2220_v5  ;;  %vm1964_vm5 = vcmask 1014784  }
 0x504   : > { %v2227_v13 = vsel %vm2226_vm7, %v2208_v62, %v2225_v38  ;;  %v2155_v32 = vpop.permute.xlu1 %2154 }
 0x505   : > { %v2166_v50 = vrot.slane %v2155_v32, 4  ;;  %v4076_v16 = vpop.permute.xlu0 %2052  ;;  %v2829_v53 = vcombine.low %v2227_v13, %v2232_v34  ;;  %v2830_v18 = vcombine.high %v2227_v13, %v2232_v34 }
 0x506   : > { %v2063_v0 = vrot.slane %v4076_v16, 4 }
 0x507   : > { %v2172_v20 = vsel %vm4374_vm9, %v2166_v50, %v2167_v46  ;;  %2486 = vmatprep.subr.bf16.mxu0 %v2830_v18  ;;  %vm4377_vm9 = vmmov %vm4368_vm1 }
 0x508   : > { %v2174_v47 = vsel %vm2173_vm8, %v2155_v32, %v2172_v20  ;;  %v2103_v48 = vpop.permute.xlu1 %2102  ;;  %2487 = vmatpush1.bf16.msra.mxu0 %v2829_v53 }
 0x509   : > { %v2114_v22 = vrot.slane %v2103_v48, 4  ;;  %v4083_v31 = vpop.permute.xlu0 %2000  ;;  %v2824_v21 = vcombine.low %v2174_v47, %v2179_v58  ;;  %v2825_v42 = vcombine.high %v2174_v47, %v2179_v58 }
 0x50a   : > { %v2011_v58 = vrot.slane %v4083_v31, 4 }
 0x50b   : > { %v2120_v33 = vsel %vm4368_vm1, %v2114_v22, %v2115_v57  ;;  %2488 = vmatprep.subr.bf16.mxu0 %v2825_v42 }
 0x50c   : > { %v2121_v2 = vsel %vm4369_vm6, %v2103_v48, %v2120_v33  ;;  %v2051_v61 = vpop.permute.xlu1 %2050  ;;  %2489 = vmatpush1.bf16.msra.mxu0 %v2824_v21  ;;  %vm4378_vm6 = vmmov %vm4368_vm1 }
 0x50d   : > { %v2062_v36 = vrot.slane %v2051_v61, 4  ;;  %v4090_v63 = vpop.permute.xlu0 %1947  ;;  %v2819_v25 = vcombine.low %v2121_v2, %v2126_v59  ;;  %v2820_v34 = vcombine.high %v2121_v2, %v2126_v59 }
 0x50e   : > { %v1958_v26 = vrot.slane %v4090_v63, 4 }
 0x50f   : > { %v2068_v12 = vsel %vm4375_vm13, %v2062_v36, %v2063_v0  ;;  %2490 = vmatprep.subr.bf16.mxu0 %v2820_v34  ;;  %vm4379_vm13 = vmmov %vm4368_vm1 }
 0x510   : > { %v2069_v56 = vsel %vm4371_vm4, %v2051_v61, %v2068_v12  ;;  %v1999_v23 = vpop.permute.xlu1 %1998  ;;  %2491 = vmatpush1.bf16.msra.mxu0 %v2819_v25  ;;  %vm4380_vm4 = vmmov %vm4368_vm1 }
 0x511   : > { %v2010_v41 = vrot.slane %v1999_v23, 4  ;;  %v4097_v37 = vpop.permute.xlu0 %1953  ;;  %v2814_v29 = vcombine.low %v2069_v56, %v2074_v3  ;;  %v2815_v19 = vcombine.high %v2069_v56, %v2074_v3 }
 0x512   : > { %v1961_v13 = vrot.slane %v4097_v37, 4 }
 0x513   : > { %v2016_v59 = vsel %vm4376_vm2, %v2010_v41, %v2011_v58  ;;  %2492 = vmatprep.subr.bf16.mxu0 %v2815_v19  ;;  %vm4381_vm2 = vmmov %vm4368_vm1 }
 0x514   : > { %v2017_v14 = vsel %vm1231_vm3, %v1999_v23, %v2016_v59  ;;  %v1946_v10 = vpop.permute.xlu1 %1945  ;;  %2493 = vmatpush1.bf16.msra.mxu0 %v2814_v29  ;;  %v4131_v23 = vld [vmem:[#allocation2 + $0x18] sm:$0xff] }
 0x515   : > { %v1957_v43 = vrot.slane %v1946_v10, 4  ;;  %v2218_v6 = vpop.permute.xlu0 %2217  ;;  %v2809_v62 = vcombine.low %v2017_v14, %v4054_v44  ;;  %v2810_v40 = vcombine.high %v2017_v14, %v4054_v44 }
 0x516   : > { %v2224_v38 = vrot.slane %v2218_v6, 4 }
 0x517   : > { %v1963_v3 = vsel %vm4377_vm9, %v1957_v43, %v1958_v26  ;;  %2494 = vmatprep.subr.bf16.mxu0 %v2810_v40  ;;  %vm4382_vm9 = vcmask 916480  }
 0x518   : > { %v1965_v32 = vsel %vm1964_vm5, %v1946_v10, %v1963_v3  ;;  %v1952_v50 = vpop.permute.xlu1 %1951  ;;  %v2233_v53 = vsel %vm4368_vm1, %v2223_v9, %v2224_v38  ;;  %v2235_v18 = vsel %vm2226_vm7, %v2218_v6, %v2224_v38  ;;  %2495 = vmatpush1.bf16.msra.mxu0 %v2809_v62  ;;  %vm4383_vm1 = vmmov %vm4382_vm9 }
 0x519   : > { %v1960_v20 = vrot.slane %v1952_v50, 4  ;;  %v2234_v44 = vsel %vm2226_vm7, %v4000_v35, %v2233_v53  ;;  %2247 = vst [vmem:[#allocation3 + $0x114] sm:$0xf] %v2235_v18  ;;  %v2165_v47 = vpop.permute.xlu0 %2164 }
 0x51a   : > { %v2171_v48 = vrot.slane %v2165_v47, 4 }
 0x51b   : > { %v1969_v22 = vsel %vm4378_vm6, %v1960_v20, %v1961_v13  ;;  %vm4385_vm6 = vmmov %vm4381_vm2 }
 0x51c   : > { %v1970_v21 = vsel %vm1964_vm5, %v1952_v50, %v1969_v22  ;;  %v2212_v42 = vpop.permute.xlu1 %2211  ;;  %v2180_v9 = vsel %vm4379_vm13, %v2170_v7, %v2171_v48  ;;  %v2182_v33 = vsel %vm2173_vm8, %v2165_v47, %v2171_v48  ;;  %v2800_v7 = vcombine.high %v3976_v27, %v4131_v23 }
 0x51d   : > { %v2221_v2 = vrot.slane %v2212_v42, 4  ;;  %v2181_v35 = vsel %vm2173_vm8, %v4013_v4, %v2180_v9  ;;  %2194 = vst [vmem:[#allocation3 + $0xec] sm:$0xf] %v2182_v33  ;;  %v2113_v61 = vpop.permute.xlu0 %2112  ;;  %v2804_v36 = vcombine.low %v1965_v32, %v1970_v21  ;;  %v2805_v25 = vcombine.high %v1965_v32, %v1970_v21 }
 0x51e   : > { %v2119_v34 = vrot.slane %v2113_v61, 4  ;;  %vm4386_vm13 = vcmask 949248  }
 0x51f   : > { %v2228_v12 = vsel %vm4380_vm4, %v2220_v5, %v2221_v2  ;;  %v2230_v56 = vsel %vm2226_vm7, %v2212_v42, %v2221_v2  ;;  %2496 = vmatprep.subr.bf16.mxu0 %v2805_v25  ;;  %vm4387_vm4 = vmmov %vm4386_vm13 }
 0x520   : > { %v2229_v4 = vsel %vm2226_vm7, %v4064_v17, %v2228_v12  ;;  %2244 = vst [vmem:[#allocation3 + $0x100] sm:$0xf] %v2230_v56  ;;  %v2159_v41 = vpop.permute.xlu1 %2158  ;;  %v2127_v29 = vsel %vm4381_vm2, %v2118_v52, %v2119_v34  ;;  %v2129_v19 = vsel %vm4382_vm9, %v2113_v61, %v2119_v34  ;;  %2497 = vmatpush1.bf16.msra.mxu0 %v2804_v36  ;;  %vm4384_vm7 = vmmov %vm4381_vm2 }
 0x521   : > { %v2168_v5 = vrot.slane %v2159_v41, 4  ;;  %v2128_v59 = vsel %vm4383_vm1, %v4024_v28, %v2127_v29  ;;  %2141 = vst [vmem:[#allocation3 + $0xc4] sm:$0xf] %v2129_v19  ;;  %v2061_v14 = vpop.permute.xlu0 %2060  ;;  %2498 = vmatprep.subr.bf16.mxu0 %v2800_v7  ;;  %v2831_v10 = vcombine.low %v2229_v4, %v2234_v44  ;;  %v2832_v43 = vcombine.high %v2229_v4, %v2234_v44  ;;  %vm4390_vm9 = vmmov %vm4383_vm1 }
 0x522   : > { %v2067_v6 = vrot.slane %v2061_v14, 4  ;;  %v2799_v17 = vcombine.low %v3976_v27, %v4131_v23  ;;  %v4155_v27 = vld [vmem:[#allocation4 + $0x8] sm:$0xf] }
 0x523   : > { %v2175_v52 = vsel %vm4384_vm7, %v2167_v46, %v2168_v5  ;;  %v2177_v62 = vsel %vm2173_vm8, %v2159_v41, %v2168_v5  ;;  %2527 = vmatprep.subr.bf16.mxu1 %v2832_v43  ;;  %vm4391_vm7 = vmmov %vm4385_vm6 }
 0x524   : > { %v2176_v40 = vsel %vm2173_vm8, %v4066_v30, %v2175_v52  ;;  %2191 = vst [vmem:[#allocation3 + $0xd8] sm:$0xf] %v2177_v62  ;;  %v2107_v28 = vpop.permute.xlu1 %2106  ;;  %v2075_v38 = vsel %vm4385_vm6, %v2066_v51, %v2067_v6  ;;  %v2077_v3 = vsel %vm4386_vm13, %v2061_v14, %v2067_v6  ;;  %2499 = vmatpush1.bf16.msra.mxu0 %v2799_v17  ;;  %vm4388_vm8 = vmmov %vm4381_vm2  ;;  %v3031_v17 = vld [vmem:[#allocation3 + $0x10] ss:$20 sps:$4 sm:$0xff]  }
 0x525   : > { %2528 = vmatpush1.bf16.msra.mxu1 %v2831_v10  ;;  %v2116_v32 = vrot.slane %v2107_v28, 4  ;;  %v2076_v46 = vsel %vm4387_vm4, %v4034_v24, %v2075_v38  ;;  %2089 = vst [vmem:[#allocation3 + $0x9c] sm:$0xf] %v2077_v3  ;;  %v2009_v50 = vpop.permute.xlu0 %2008  ;;  %v2826_v53 = vcombine.low %v2176_v40, %v2181_v35  ;;  %v2827_v30 = vcombine.high %v2176_v40, %v2181_v35  ;;  %vm4389_vm2 = vmmov %vm4383_vm1 }
 0x526   : > { %2906 = vmatprep.subr.bf16.mxu0 %v3139_v1  ;;  %v2015_v18 = vrot.slane %v2009_v50, 4  ;;  %vm4392_vm13 = vmmov %vm4387_vm4 }
 0x527   : > { %v2122_v51 = vsel %vm4388_vm8, %v2115_v57, %v2116_v32  ;;  %v2124_v20 = vsel %vm4389_vm2, %v2107_v28, %v2116_v32  ;;  %2834 = vmatmul.mubr.msk.bf16.vlgmr.msra.gmra.mxu0 %vm4390_vm9, %v4155_v27  ;;  %2529 = vmatprep.subr.bf16.mxu1 %v2827_v30  ;;  %v3025_v44 = vld [vmem:[#allocation3 + $0x100] ss:$20 sps:$4 sm:$0xff]  }
 0x528   : > { %v2123_v24 = vsel %vm4383_vm1, %v4069_v8, %v2122_v51  ;;  %2138 = vst [vmem:[#allocation3 + $0xb0] sm:$0xf] %v2124_v20  ;;  %v2055_v47 = vpop.permute.xlu1 %2054  ;;  %v2023_v48 = vsel %vm4391_vm7, %v2014_v39, %v2015_v18  ;;  %v2025_v22 = vsel %vm1231_vm3, %v2009_v50, %v2015_v18  ;;  %2920 = vmatprep.mubr.msk.bf16.mxu0 %vm4359_vm14, %v3139_v1  ;;  %vm4393_vm14 = vmmov %vm4387_vm4 }
 0x529   : > { %2530 = vmatpush1.bf16.msra.mxu1 %v2826_v53  ;;  %v2064_v57 = vrot.slane %v2055_v47, 4  ;;  %v2024_v21 = vsel %vm1231_vm3, %v4044_v49, %v2023_v48  ;;  %2037 = vst [vmem:[#allocation3 + $0x74] sm:$0xf] %v2025_v22  ;;  %2907 = vmatpush3.bf16.msra.mxu0 %v3025_v44  ;;  %v1956_v42 = vpop.permute.xlu0 %1955  ;;  %v2821_v8 = vcombine.low %v2123_v24, %v2128_v59  ;;  %vm4394_vm4 = vmmov %vm4385_vm6 }
 0x52a   : > { %v2822_v9 = vcombine.high %v2123_v24, %v2128_v59  ;;  %v1962_v33 = vrot.slane %v1956_v42, 4  ;;  %2908 = vmatprep.subr.bf16.mxu0 %v3139_v1  ;;  %vm4395_vm8 = vmmov %vm4394_vm4 }
 0x52b   : > { %v2070_v39 = vsel %vm4385_vm6, %v2063_v0, %v2064_v57  ;;  %v2072_v2 = vsel %vm4392_vm13, %v2055_v47, %v2064_v57  ;;  %v3026_v35 = vld [vmem:[#allocation3 + $0xd8] ss:$20 sps:$4 sm:$0xff]   ;;  %vm4396_vm2 = vmmov %vm4394_vm4 }
 0x52c   : > { %2531 = vmatprep.subr.bf16.mxu1 %v2822_v9  ;;  %v2071_v61 = vsel %vm4393_vm14, %v4076_v16, %v2070_v39  ;;  %2086 = vst [vmem:[#allocation3 + $0x88] sm:$0xf] %v2072_v2  ;;  %v2003_v49 = vpop.permute.xlu1 %2002  ;;  %v1971_v36 = vsel %vm4394_vm4, %v1961_v13, %v1962_v33  ;;  %v1973_v25 = vsel %vm1964_vm5, %v1956_v42, %v1962_v33 }
 0x52d   : > { %2532 = vmatpush1.bf16.msra.mxu1 %v2821_v8  ;;  %v2012_v34 = vrot.slane %v2003_v49, 4  ;;  %v1972_v0 = vsel %vm1964_vm5, %v4097_v37, %v1971_v36  ;;  %1985 = vst [vmem:[#allocation3 + $0x4c] sm:$0xf] %v1973_v25  ;;  %2909 = vmatpush3.bf16.msra.mxu0 %v3026_v35  ;;  %v2816_v12 = vcombine.low %v2071_v61, %v2076_v46 }
 0x52e   : > { %v2817_v56 = vcombine.high %v2071_v61, %v2076_v46  ;;  %2910 = vmatprep.subr.bf16.mxu0 %v3139_v1 }
 0x52f   : > { %v2018_v16 = vsel %vm4395_vm8, %v2011_v58, %v2012_v34  ;;  %v2020_v7 = vsel %vm1231_vm3, %v2003_v49, %v2012_v34  ;;  %v3027_v13 = vld [vmem:[#allocation3 + $0xb0] ss:$20 sps:$4 sm:$0xff]  }
 0x530   : > { %2533 = vmatprep.subr.bf16.mxu1 %v2817_v56  ;;  %v2019_v4 = vsel %vm1231_vm3, %v4083_v31, %v2018_v16  ;;  %2034 = vst [vmem:[#allocation3 + $0x60] sm:$0xf] %v2020_v7  ;;  %v1950_v41 = vpop.permute.xlu1 %1949  ;;  %vm4397_vm3 = vmmov %vm4383_vm1 }
 0x531   : > { %2534 = vmatpush1.bf16.msra.mxu1 %v2816_v12  ;;  %v1959_v37 = vrot.slane %v1950_v41, 4  ;;  %2911 = vmatpush3.bf16.msra.mxu0 %v3027_v13  ;;  %v2811_v29 = vcombine.low %v2019_v4, %v2024_v21  ;;  %v2812_v19 = vcombine.high %v2019_v4, %v2024_v21 }
 0x532   : > { %2912 = vmatprep.subr.bf16.mxu0 %v3139_v1 }
 0x533   : > { %v1966_v58 = vsel %vm4396_vm2, %v1958_v26, %v1959_v37  ;;  %v1968_v5 = vsel %vm1964_vm5, %v1950_v41, %v1959_v37  ;;  %2535 = vmatprep.subr.bf16.mxu1 %v2812_v19  ;;  %v3028_v59 = vld [vmem:[#allocation3 + $0x88] ss:$20 sps:$4 sm:$0xff]   ;;  %v2802_v26 = vcombine.high %v3967_v45, %v4131_v23 }
 0x534   : > { %v1967_v31 = vsel %vm1964_vm5, %v4090_v63, %v1966_v58  ;;  %1982 = vst [vmem:[#allocation3 + $0x38] sm:$0xf] %v1968_v5  ;;  %v2801_v63 = vcombine.low %v3967_v45, %v4131_v23  ;;  %vm4398_vm5 = vmmov %vm4383_vm1 }
 0x535   : > { %2536 = vmatpush1.bf16.msra.mxu1 %v2811_v29  ;;  %2913 = vmatpush3.bf16.msra.mxu0 %v3028_v59  ;;  %v2806_v14 = vcombine.low %v1967_v31, %v1972_v0  ;;  %v2807_v10 = vcombine.high %v1967_v31, %v1972_v0 }
 0x536   : > { %2914 = vmatprep.subr.bf16.mxu0 %v3139_v1 }
 0x537   : > { %2537 = vmatprep.subr.bf16.mxu1 %v2807_v10  ;;  %v3029_v43 = vld [vmem:[#allocation3 + $0x60] ss:$20 sps:$4 sm:$0xff]  }
 0x539   : > { %2538 = vmatpush1.bf16.msra.mxu1 %v2806_v14  ;;  %2915 = vmatpush3.bf16.msra.mxu0 %v3029_v43 }
 0x53a   : > { %2539 = vmatprep.subr.bf16.mxu1 %v2802_v26  ;;  %2916 = vmatprep.subr.bf16.mxu0 %v3139_v1 }
 0x53b   : > { %v3030_v6 = vld [vmem:[#allocation3 + $0x38] ss:$20 sps:$4 sm:$0xff]  }
 0x53d   : > { %2540 = vmatpush1.bf16.msra.mxu1 %v2801_v63  ;;  %2917 = vmatpush3.bf16.msra.mxu0 %v3030_v6  ;;  %v2297_v52 = vpop.permute.xlu1 %2296 }
 0x53e   : > { %2918 = vmatprep.subr.bf16.mxu0 %v3139_v1 }
 0x540   : > { %2835 = vmatmul.mubr.msk.bf16.vlgmr.msra.gmra.mxu1 %vm4397_vm3, %v4155_v27 }
 0x541   : > { %2919 = vmatpush3.bf16.msra.mxu0 %v3031_v17 }
 0x544   : > { %2921 = vmatmul.mubr.msk.bf16.vlgmr.msra.gmra.mxu0 %vm4398_vm5, %v4155_v27 }
 0x5e7   : > { %v2518_v45 = vpop.f32.mrf.mxu0 }
 0x5e8   : > { %v2519_v23 = vadd.f32 %v2518_v45, %v2297_v52 }
 0x5e9   : > { %v2520_v62 = vpop.f32.mrf.mxu0 }
 0x5ea   : > { %v2606_v40 = vmax.f32 %v2519_v23, 0.0  ;;  %v2521_v28 = vadd.f32 %v2520_v62, %v2297_v52 }
 0x5eb   : > { %v2522_v38 = vpop.f32.mrf.mxu0 }
 0x5ec   : > { %v2611_v1 = vsel %vm3564_vm11, %v2606_v40, 0.0  ;;  %v2607_v3 = vmax.f32 %v2521_v28, 0.0 }
 0x5ed   : > { %2616 = vst [vmem:[%s178_s24] sm:$0xff] %v2611_v1  ;;  %v2523_v32 = vpop.f32.mrf.mxu0 }
 0x5ee   : > { %v2612_v27 = vsel %vm3572_vm12, %v2607_v3, 0.0 }
 0x5ef   : > { %2617 = vst [vmem:[%s178_s24 + $0x8] sm:$0xff] %v2612_v27 }
 0x600   : > { %v2559_v46 = vpop.f32.mrf.mxu1 }
 0x601   : > { %v2560_v50 = vadd.f32 %v2559_v46, %v2297_v52 }
 0x602   : > { %v2561_v53 = vpop.f32.mrf.mxu1 }
 0x603   : > { %v2608_v30 = vmax.f32 %v2560_v50, 0.0  ;;  %v2562_v18 = vadd.f32 %v2561_v53, %v2297_v52 }
 0x604   : > { %v2563_v51 = vpop.f32.mrf.mxu1  ;;  %v2600_v44 = vpop.f32.mrf.mxu0 }
 0x605   : > { %v2613_v20 = vsel %vm3585_vm10, %v2608_v30, 0.0  ;;  %v2609_v54 = vmax.f32 %v2562_v18, 0.0  ;;  %v2601_v24 = vadd.f32 %v2600_v44, %v2297_v52 }
 0x606   : > { %2618 = vst [vmem:[%s178_s24 + $0x10] sm:$0xff] %v2613_v20  ;;  %v2564_v47 = vpop.f32.mrf.mxu1  ;;  %v2922_v48 = vpop.f32.mrf.mxu0 }
 0x607   : > { %v2614_v55 = vsel %vm3590_vm15, %v2609_v54, 0.0  ;;  %v2610_v22 = vmax.f32 %v2601_v24, 0.0 }
 0x608   : > { %2619 = vst [vmem:[%s178_s24 + $0x18] sm:$0xff] %v2614_v55  ;;  %v2603_v57 = vpop.f32.mrf.mxu0 }
 0x609   : > { %v2615_v15 = vsel %vm3597_vm0, %v2610_v22, 0.0 }
 0x60a   : > { %2620 = vst [vmem:[%s178_s24 + $0x20] sm:$0xff] %v2615_v15  ;;  %v2923_v60 = vpop.f32.mrf.mxu0 }
 0x60b   : > { %3073 = shalt.err (!%p3070_p0)
}
 0x60c   : > { %s3074_s7 = scalar_lea.hbm %s4229_s29, 640  ;;  %s3078_s10 = scalar_lea.hbm %s4277_s3, 1280 }
 0x60d   : > { %p3075_p1 = scmp.ne.s32.totalorder %s4229_s29, %s3074_s7  ;;  %p3079_p4 = scmp.lt.s32.totalorder %s4229_s29, %s4277_s3 }
 0x60e   : > { %p3080_p7 = scmp.lt.s32.totalorder %s3078_s10, %s3074_s7 }
 0x60f   : > { %p3076_p2 = pnand %p3075_p1, %p3207_p5 }
 0x610   : > { %p3081_p8 = por %p3080_p7, %p3079_p4 }
 0x611   : > { %p3077_p3 = pneg %p3076_p2 }
 0x613   : > { %p3082_p6 = pnand %p3081_p8, %p3077_p3 }
 0x615   : > { %3085 = shalt.err (!%p3082_p6)
}
 0x616   : > { %2941 = dma.vmem_to_hbm [thread:$0]  (%p3207_p5), %s4231_s26, 640, %s4229_s29, %s2622_s16  }
 0x617 PF: > { %p2953_p9 = scmp.ge.s32.totalorder %s3124_s15, 2  ;;  %s2648_s19 = sand.u32 1, %s3112_s12  }
 0x618   : > { %p4399_p10 = scmp.ne.s32.totalorder %s4287_s23, 0  ;;  %s2649_s20 = scalar_lea.sflag [#allocation6], %s2648_s19 }
 0x61a   : > { %p2948_p11 = pnand %p2953_p9, %p4399_p10 }
 0x61c   : > { %p2949_p12 = pneg %p2948_p11 }
 0x61e   : > { %3107 = dma.done.wait (%p2949_p12), %s2649_s20, 640  }
 0x61f   : > { %3109 = vsyncadd (%p2949_p12), %s2649_s20, 4294966656  ;;  %p14_p13 = scmp.ge.s32.totalorder %s3194_s18, 4   ;;  %s4400_s12 = smov %s3116_s13 }
 0x620   : > { %s4401_s13 = smov %s3120_s14  ;;  %s4402_s14 = smov %s3205_s21 }
 0x621   : > { %s4403_s15 = smov %s3194_s18  ;;  %16 = sbr.rel (!%p14_p13) target bundleno = 4 (0x4), region = 76 }
 0x626   :  { %2654 = vsyncpa [#allocation5], 1 }
 0x627   :  { %2656 = vsyncpa [#allocation5 + $0x1], 1 }
 0x628   :  { %2657 = vsyncpa [#allocation6], 1 }
 0x629   :  { %2659 = vsyncpa [#allocation6 + $0x1], 1 }

</bundles_post_ra>
